<compile_context>
chip_gen: v7x
topology: tpu7x:2x2x1
jax: 0.10.0
libtpu: 0.0.40
codegen_flags: <defaults>
</compile_context>

<pallas_src>
import math
import functools

import jax
import jax.numpy as jnp
from jax import lax
from jax.experimental import pallas as pl
from jax.experimental.pallas import tpu as pltpu


# ---------------------------------------------------------------------------
# Fused encoder kernel
# ---------------------------------------------------------------------------

def _layernorm(x, g, b, eps=1e-5):
    """LayerNorm over the last dim of a 2-D f32 value (g, b broadcast as (1, D))."""
    mu = jnp.mean(x, axis=-1, keepdims=True)
    xc = x - mu
    var = jnp.mean(xc * xc, axis=-1, keepdims=True)
    return xc * lax.rsqrt(var + eps) * g + b


def _make_encoder_kernel(B, S, D, H, compute_dtype):
    HD = D // H
    BS = B * S
    scale = 1.0 / math.sqrt(HD)
    f32 = jnp.float32

    def kernel(eot_ref,                                      # SMEM: (B,) flat EOT idx
               prompts_ref, pos_ref, lnf_ref, tproj_ref,     # shared (layer-invariant)
               wqkv_ref, bqkv_ref, wout_ref, vec_ref,        # per-layer (streamed)
               bfc1_ref, wfc1_ref, wfc2_ref,
               out_ref,
               x_s, q_s, k_s, v_s, o_s, g_s):
        layer = pl.program_id(0)
        n_layers = pl.num_programs(0)

        # ---- layer 0: x = prompts + positional_embedding -> VMEM carry ------
        @pl.when(layer == 0)
        def _init():
            def body(b, c):
                r0 = pl.multiple_of(b * S, S)
                x_s[pl.ds(r0, S), :] = (prompts_ref[pl.ds(r0, S), :]
                                        + pos_ref[...]).astype(f32)
                return c
            lax.fori_loop(0, B, body, 0, unroll=True)

        x = x_s[...]                                   # (BS, D) f32 carry
        vec = vec_ref[0]                               # (6, D): ln1 g/b, ln2 g/b, b_out, b_fc2

        # ----------- attention branch: x += MHA(ln1(x)) @ W_out + b_out ------
        xn = _layernorm(x, vec[0:1, :], vec[1:2, :])
        xn_c = xn.astype(compute_dtype)                # cast once, reused by all heads

        row = lax.broadcasted_iota(jnp.int32, (S, S), 0)
        col = lax.broadcasted_iota(jnp.int32, (S, S), 1)
        causal = col <= row                            # built once per layer

        attn0 = jnp.broadcast_to(vec[4:5, :], (BS, D)).astype(f32)   # init = b_out

        def head_body(h, attn_acc):
            # Head-major weights: leading-axis ref index, no lane-axis slicing.
            q_s[...] = (jnp.dot(xn_c, wqkv_ref[0, h],
                                preferred_element_type=f32) + bqkv_ref[0, h])
            k_s[...] = (jnp.dot(xn_c, wqkv_ref[0, H + h],
                                preferred_element_type=f32) + bqkv_ref[0, H + h])
            v_s[...] = (jnp.dot(xn_c, wqkv_ref[0, 2 * H + h],
                                preferred_element_type=f32) + bqkv_ref[0, 2 * H + h])

            def batch_body(b, c):
                r0 = pl.multiple_of(b * S, S)          # sublane-aligned row slice
                qb = q_s[pl.ds(r0, S), :].astype(compute_dtype)
                kb = k_s[pl.ds(r0, S), :].astype(compute_dtype)
                vb = v_s[pl.ds(r0, S), :].astype(compute_dtype)
                s = lax.dot_general(qb, kb, (((1,), (1,)), ((), ())),
                                    preferred_element_type=f32) * scale
                s = jnp.where(causal, s, jnp.float32(-1e9))
                s = s - jnp.max(s, axis=-1, keepdims=True)
                p = jnp.exp(s)
                # approx reciprocal -> EUP slot; deliberate ~1e-4 rel. divergence.
                p = p * pl.reciprocal(jnp.sum(p, axis=-1, keepdims=True),
                                      approx=True)
                o_s[pl.ds(r0, S), :] = jnp.dot(p.astype(compute_dtype), vb,
                                               preferred_element_type=f32)
                return c
            lax.fori_loop(0, B, batch_body, 0, unroll=True)

            # Row-split W_out: accumulate this head's out-projection directly;
            # the lane-axis concat over heads disappears.
            return attn_acc + jnp.dot(o_s[...].astype(compute_dtype),
                                      wout_ref[0, h],
                                      preferred_element_type=f32)

        attn = lax.fori_loop(0, H, head_body, attn0, unroll=True)
        x = x + attn                                   # residual (f32)

        # ----------- MLP branch: x += fc2(QuickGELU(fc1(ln2(x)))) ------------
        xn2 = _layernorm(x, vec[2:3, :], vec[3:4, :])
        h1 = (jnp.dot(xn2.astype(compute_dtype), wfc1_ref[0],
                      preferred_element_type=f32) + bfc1_ref[0])
        h1 = h1 * jax.nn.sigmoid(1.702 * h1)           # QuickGELU, f32 elementwise
        h2 = (jnp.dot(h1.astype(compute_dtype), wfc2_ref[0],
                      preferred_element_type=f32) + vec[5:6, :])
        x = x + h2                                     # residual (f32)

        x_s[...] = x                                   # carry for next layer

        # -------- last layer: EOT gather -> ln_final -> text_projection ------
        # (LayerNorm is row-wise, so gathering first then normalizing the B
        #  gathered rows is exactly equivalent to ln_final(x)[eot].)
        @pl.when(layer == n_layers - 1)
        def _finish():
            def gather(b, c):
                g_s[pl.ds(b, 1), :] = x_s[pl.ds(eot_ref[b], 1), :]
                return c
            lax.fori_loop(0, B, gather, 0, unroll=True)
            gf = _layernorm(g_s[...], lnf_ref[0:1, :], lnf_ref[1:2, :])
            out_ref[...] = jnp.dot(gf.astype(compute_dtype), tproj_ref[...],
                                   preferred_element_type=f32
                                   ).astype(out_ref.dtype)

    return kernel


# ---------------------------------------------------------------------------
# Wrapper: host side only does weight re-layout / bf16 cast / pallas_call
# ---------------------------------------------------------------------------

def text_encoder_forward(prompts, tokenized_prompts, params, n_heads,
                         weight_dtype=jnp.bfloat16):
    """Mirrors TextEncoder.forward.

    prompts:           (B, S, D) float32
    tokenized_prompts: (B, S)    int32
    returns:           (B, proj_dim) float32
    """
    B, S, D = prompts.shape
    L = params["w_qkv"].shape[0]
    H = n_heads
    HD = D // H
    M = params["w_fc1"].shape[-1]
    P = params["text_projection"].shape[-1]
    BS = B * S
    f32 = jnp.float32
    assert D % H == 0 and params["w_qkv"].shape[-1] == 3 * D

    # ---- host-side weight re-layout (done once; negligible vs encoder cost) --
    # Q/K/V head-major: (L, 3H, D, HD) -> head selection is a leading-axis index.
    wqkv_h = (params["w_qkv"].reshape(L, D, 3, H, HD)
              .transpose(0, 2, 3, 1, 4).reshape(L, 3 * H, D, HD)
              .astype(weight_dtype))
    bqkv_h = params["b_qkv"].reshape(L, 3 * H, 1, HD).astype(f32)
    # W_out split by head along its input rows: head un-permute folded away.
    wout_h = params["w_out"].reshape(L, H, HD, D).astype(weight_dtype)
    wfc1 = params["w_fc1"].astype(weight_dtype)
    wfc2 = params["w_fc2"].astype(weight_dtype)
    tproj = params["text_projection"].astype(weight_dtype)

    # Pack the D-wide per-layer vectors into one slab (fewer DMA descriptors).
    vec6 = jnp.stack([params["ln1_g"], params["ln1_b"],
                      params["ln2_g"], params["ln2_b"],
                      params["b_out"], params["b_fc2"]], axis=1).astype(f32)  # (L,6,D)
    bfc1 = params["b_fc1"].reshape(L, 1, M).astype(f32)
    lnf = jnp.stack([params["lnf_g"], params["lnf_b"]], axis=0).astype(f32)   # (2,D)

    prompts_flat = prompts.reshape(BS, D).astype(f32)
    pos = params["pos_emb"].astype(f32)                                        # (S,D)

    # Flat EOT indices, scalar-prefetched to SMEM (replaces the one-hot matmul).
    eot = (jnp.arange(B, dtype=jnp.int32) * S
           + jnp.argmax(tokenized_prompts, axis=-1).astype(jnp.int32))

    def shared(shape):
        nd = len(shape)
        return pl.BlockSpec(shape, lambda l, e, nd=nd: (0,) * nd)

    def per_layer(shape):
        nd = len(shape)
        return pl.BlockSpec((1,) + shape, lambda l, e, nd=nd: (l,) + (0,) * nd)

    kernel = _make_encoder_kernel(B, S, D, H, weight_dtype)

    grid_spec = pltpu.PrefetchScalarGridSpec(
        num_scalar_prefetch=1,
        grid=(L,),
        in_specs=[
            shared((BS, D)),               # prompts
            shared((S, D)),                # positional embedding
            shared((2, D)),                # ln_final gamma / beta
            shared((D, P)),                # text_projection (bf16)
            per_layer((3 * H, D, HD)),     # W_q/k/v head-major (bf16)
            per_layer((3 * H, 1, HD)),     # b_q/k/v head-major (f32)
            per_layer((H, HD, D)),         # W_out row-split by head (bf16)
            per_layer((6, D)),             # ln1 g/b, ln2 g/b, b_out, b_fc2
            per_layer((1, M)),             # b_fc1
            per_layer((D, M)),             # w_fc1 (bf16)
            per_layer((M, D)),             # w_fc2 (bf16)
        ],
        out_specs=pl.BlockSpec((B, P), lambda l, e: (0, 0)),
        scratch_shapes=[
            pltpu.VMEM((BS, D), f32),      # activation carry across layers
            pltpu.VMEM((BS, HD), f32),     # q (current head)
            pltpu.VMEM((BS, HD), f32),     # k
            pltpu.VMEM((BS, HD), f32),     # v
            pltpu.VMEM((BS, HD), f32),     # per-head attention output
            pltpu.VMEM((B, D), f32),       # gathered EOT rows
        ],
    )

    out = pl.pallas_call(
        kernel,
        out_shape=jax.ShapeDtypeStruct((B, P), prompts.dtype),
        grid_spec=grid_spec,
        compiler_params=pltpu.CompilerParams(
            dimension_semantics=("arbitrary",),        # layers are sequential
            vmem_limit_bytes=48 * 1024 * 1024),        # explicit; < v7x 64 MiB physical
    )(eot, prompts_flat, pos, lnf, tproj,
      wqkv_h, bqkv_h, wout_h, vec6, bfc1, wfc1, wfc2)
    return out


# ---------------------------------------------------------------------------
# Pure-JAX references
# ---------------------------------------------------------------------------

def _ln_ref(x, g, b, eps=1e-5):
    mu = x.mean(-1, keepdims=True)
    xc = x - mu
    var = (xc * xc).mean(-1, keepdims=True)
    return xc * lax.rsqrt(var + eps) * g + b


def text_encoder_reference_mixed(prompts, tokenized_prompts, params, n_heads):
    """Mirrors the kernel's numeric policy exactly: bf16 matmul operands,
    f32 accumulation, f32 LayerNorm/softmax/residual."""
    bf16, f32 = jnp.bfloat16, jnp.float32
    B, S, D = prompts.shape
    L = params["w_qkv"].shape[0]
    H = n_heads
    HD = D // H
    scale = 1.0 / math.sqrt(HD)

    def mm(a, w):
        return jnp.dot(a.astype(bf16), w.astype(bf16), preferred_element_type=f32)

    x = (prompts + params["pos_emb"][None]).astype(f32)
    mask = jnp.tril(jnp.ones((S, S), bool))
    for l in range(L):
        xn = _ln_ref(x, params["ln1_g"][l], params["ln1_b"][l])
        qkv = (mm(xn.reshape(B * S, D), params["w_qkv"][l]).reshape(B, S, 3 * D)
               + params["b_qkv"][l])
        q, k, v = jnp.split(qkv, 3, axis=-1)
        q = q.reshape(B, S, H, HD).transpose(0, 2, 1, 3)
        k = k.reshape(B, S, H, HD).transpose(0, 2, 1, 3)
        v = v.reshape(B, S, H, HD).transpose(0, 2, 1, 3)
        s = jnp.einsum("bhqd,bhkd->bhqk", q.astype(bf16), k.astype(bf16),
                       preferred_element_type=f32) * scale
        s = jnp.where(mask[None, None], s, -1e9)
        s = s - s.max(-1, keepdims=True)
        p = jnp.exp(s)
        p = p / p.sum(-1, keepdims=True)
        a = jnp.einsum("bhqk,bhkd->bhqd", p.astype(bf16), v.astype(bf16),
                       preferred_element_type=f32)
        a = a.transpose(0, 2, 1, 3).reshape(B, S, D)
        a = (mm(a.reshape(B * S, D), params["w_out"][l]).reshape(B, S, D)
             + params["b_out"][l])
        x = x + a
        xn = _ln_ref(x, params["ln2_g"][l], params["ln2_b"][l])
        h1 = (mm(xn.reshape(B * S, D), params["w_fc1"][l]).reshape(B, S, -1)
              + params["b_fc1"][l])
        h1 = h1 * jax.nn.sigmoid(1.702 * h1)
        h2 = (mm(h1.reshape(B * S, -1), params["w_fc2"][l]).reshape(B, S, D)
              + params["b_fc2"][l])
        x = x + h2
    x = _ln_ref(x, params["lnf_g"], params["lnf_b"])
    eot = jnp.argmax(tokenized_prompts, axis=-1)
    gathered = x[jnp.arange(B), eot]
    return mm(gathered, params["text_projection"])


def text_encoder_reference_f32(prompts, tokenized_prompts, params, n_heads):
    """Faithful full-f32 forward of the PyTorch module."""
    B, S, D = prompts.shape
    L = params["w_qkv"].shape[0]
    H = n_heads
    HD = D // H
    scale = 1.0 / math.sqrt(HD)
    with jax.default_matmul_precision("highest"):
        x = prompts + params["pos_emb"][None]
        mask = jnp.tril(jnp.ones((S, S), bool))
        for l in range(L):
            xn = _ln_ref(x, params["ln1_g"][l], params["ln1_b"][l])
            qkv = xn @ params["w_qkv"][l] + params["b_qkv"][l]
            q, k, v = jnp.split(qkv, 3, axis=-1)
            q = q.reshape(B, S, H, HD).transpose(0, 2, 1, 3)
            k = k.reshape(B, S, H, HD).transpose(0, 2, 1, 3)
            v = v.reshape(B, S, H, HD).transpose(0, 2, 1, 3)
            s = jnp.einsum("bhqd,bhkd->bhqk", q, k) * scale
            s = jnp.where(mask[None, None], s, -1e9)
            p = jax.nn.softmax(s, axis=-1)
            a = jnp.einsum("bhqk,bhkd->bhqd", p, v).transpose(0, 2, 1, 3)
            a = a.reshape(B, S, D) @ params["w_out"][l] + params["b_out"][l]
            x = x + a
            xn = _ln_ref(x, params["ln2_g"][l], params["ln2_b"][l])
            h1 = xn @ params["w_fc1"][l] + params["b_fc1"][l]
            h1 = h1 * jax.nn.sigmoid(1.702 * h1)
            h2 = h1 @ params["w_fc2"][l] + params["b_fc2"][l]
            x = x + h2
        x = _ln_ref(x, params["lnf_g"], params["lnf_b"])
        eot = jnp.argmax(tokenized_prompts, axis=-1)
        gathered = x[jnp.arange(B), eot]
        return gathered @ params["text_projection"]


# ---------------------------------------------------------------------------
# Deterministic synthetic parameters (per-layer weights stacked on axis 0)
# ---------------------------------------------------------------------------

def init_params(key, n_layers, seq_len, d_model, mlp_dim, proj_dim):
    def nrm(k, shape, scale=0.02):
        return (scale * jax.random.normal(k, shape)).astype(jnp.float32)

    k = jax.random.split(key, 6)
    L, D, M = n_layers, d_model, mlp_dim
    return {
        "pos_emb": nrm(k[0], (seq_len, D)),
        "lnf_g": jnp.ones((D,), jnp.float32),
        "lnf_b": jnp.zeros((D,), jnp.float32),
        "text_projection": nrm(k[1], (D, proj_dim)),
        "ln1_g": jnp.ones((L, D), jnp.float32),
        "ln1_b": jnp.zeros((L, D), jnp.float32),
        "w_qkv": nrm(k[2], (L, D, 3 * D)),
        "b_qkv": jnp.zeros((L, 3 * D), jnp.float32),
        "w_out": nrm(k[3], (L, D, D)),
        "b_out": jnp.zeros((L, D), jnp.float32),
        "ln2_g": jnp.ones((L, D), jnp.float32),
        "ln2_b": jnp.zeros((L, D), jnp.float32),
        "w_fc1": nrm(k[4], (L, D, M)),
        "b_fc1": jnp.zeros((L, M), jnp.float32),
        "w_fc2": nrm(k[5], (L, M, D)),
        "b_fc2": jnp.zeros((L, D), jnp.float32),
    }


# ---------------------------------------------------------------------------

if __name__ == "__main__":
    B, S, D = 2, 8, 32
    N_HEADS, N_LAYERS = 4, 2
    MLP_DIM, PROJ_DIM = 4 * D, 16

    root = jax.random.PRNGKey(0)
    k_params, k_prompts, k_tok = jax.random.split(root, 3)

    params = init_params(k_params, N_LAYERS, S, D, MLP_DIM, PROJ_DIM)
    prompts = (0.02 * jax.random.normal(k_prompts, (B, S, D))).astype(jnp.float32)
    tokenized_prompts = jax.random.randint(k_tok, (B, S), 0, 1000, dtype=jnp.int32)

    fwd = jax.jit(functools.partial(text_encoder_forward, n_heads=N_HEADS))
    out = jax.block_until_ready(fwd(prompts, tokenized_prompts, params))

    assert out.shape == (B, PROJ_DIM), out.shape
    assert bool(jnp.all(jnp.isfinite(out)))

    # Primary check: same mixed-precision policy (bf16 operands, f32 accumulate).
    ref_mixed = jax.block_until_ready(
        text_encoder_reference_mixed(prompts, tokenized_prompts, params, N_HEADS))
    assert bool(jnp.allclose(out, ref_mixed, rtol=5e-3, atol=1e-3)), (
        f"mixed-ref max abs diff {float(jnp.max(jnp.abs(out - ref_mixed)))}")

    # Sanity check vs the faithful f32 module (bounds bf16-streaming error).
    ref_f32 = jax.block_until_ready(
        text_encoder_reference_f32(prompts, tokenized_prompts, params, N_HEADS))
    assert bool(jnp.allclose(out, ref_f32, rtol=5e-2, atol=5e-3)), (
        f"f32-ref max abs diff {float(jnp.max(jnp.abs(out - ref_f32)))}")

    print("KERNEL_OK")
</pallas_src>

<mosaic_0001>
module attributes {stable_mosaic.version = 11 : i64} {
  func.func @kernel(%arg0: i32, %arg1: memref<2xi32, #tpu.memory_space<smem>>, %arg2: memref<16x32xf32, #tpu.memory_space<vmem>>, %arg3: memref<8x32xf32, #tpu.memory_space<vmem>>, %arg4: memref<2x32xf32, #tpu.memory_space<vmem>>, %arg5: memref<32x16xbf16, #tpu.memory_space<vmem>>, %arg6: memref<1x12x32x8xbf16, #tpu.memory_space<vmem>>, %arg7: memref<1x12x1x8xf32, #tpu.memory_space<vmem>>, %arg8: memref<1x4x8x32xbf16, #tpu.memory_space<vmem>>, %arg9: memref<1x6x32xf32, #tpu.memory_space<vmem>>, %arg10: memref<1x1x128xf32, #tpu.memory_space<vmem>>, %arg11: memref<1x32x128xbf16, #tpu.memory_space<vmem>>, %arg12: memref<1x128x32xbf16, #tpu.memory_space<vmem>>, %arg13: memref<2x16xf32, #tpu.memory_space<vmem>>, %arg14: memref<16x32xf32, #tpu.memory_space<vmem>>, %arg15: memref<16x8xf32, #tpu.memory_space<vmem>>, %arg16: memref<16x8xf32, #tpu.memory_space<vmem>>, %arg17: memref<16x8xf32, #tpu.memory_space<vmem>>, %arg18: memref<16x8xf32, #tpu.memory_space<vmem>>, %arg19: memref<2x32xf32, #tpu.memory_space<vmem>>) attributes {dimension_semantics = [#tpu.dimension_semantics<arbitrary>], iteration_bounds = array<i64: 2>, scalar_prefetch = 1 : i64, scratch_operands = 6 : i64, tpu.core_type = #tpu.core_type<tc>, window_params = [{pipeline_mode = #tpu.pipeline_mode<synchronous>, transform_indices = @transform_0, window_bounds = array<i64: 16, 32>}, {pipeline_mode = #tpu.pipeline_mode<synchronous>, transform_indices = @transform_1, window_bounds = array<i64: 8, 32>}, {pipeline_mode = #tpu.pipeline_mode<synchronous>, transform_indices = @transform_2, window_bounds = array<i64: 2, 32>}, {pipeline_mode = #tpu.pipeline_mode<synchronous>, transform_indices = @transform_3, window_bounds = array<i64: 32, 16>}, {transform_indices = @transform_4, window_bounds = array<i64: 1, 12, 32, 8>}, {transform_indices = @transform_5, window_bounds = array<i64: 1, 12, 1, 8>}, {transform_indices = @transform_6, window_bounds = array<i64: 1, 4, 8, 32>}, {transform_indices = @transform_7, window_bounds = array<i64: 1, 6, 32>}, {transform_indices = @transform_8, window_bounds = array<i64: 1, 1, 128>}, {transform_indices = @transform_9, window_bounds = array<i64: 1, 32, 128>}, {transform_indices = @transform_10, window_bounds = array<i64: 1, 128, 32>}, {pipeline_mode = #tpu.pipeline_mode<synchronous>, transform_indices = @transform_11, window_bounds = array<i64: 2, 16>}]} {
    %c0_i32 = arith.constant 0 : i32
    %0 = arith.cmpi eq, %arg0, %c0_i32 : i32
    %1 = arith.extui %0 : i1 to i32
    %c0_i32_0 = arith.constant 0 : i32
    %2 = arith.cmpi ne, %1, %c0_i32_0 : i32
    scf.if %2 {
      %c0_i32_279 = arith.constant 0 : i32
      %c8_i32_280 = arith.constant 8 : i32
      %490 = arith.muli %c0_i32_279, %c8_i32_280 : i32
      %491 = tpu.assume_multiple %490, 8 : i32
      %492 = arith.index_cast %491 : i32 to index
      %c0_281 = arith.constant 0 : index
      %493 = vector.load %arg2[%492, %c0_281] : memref<16x32xf32, #tpu.memory_space<vmem>>, vector<8x32xf32>
      %c0_282 = arith.constant 0 : index
      %c0_283 = arith.constant 0 : index
      %494 = vector.load %arg3[%c0_282, %c0_283] : memref<8x32xf32, #tpu.memory_space<vmem>>, vector<8x32xf32>
      %495 = arith.addf %493, %494 : vector<8x32xf32>
      %496 = arith.index_cast %491 : i32 to index
      %c0_284 = arith.constant 0 : index
      %497 = vector.load %arg14[%496, %c0_284] : memref<16x32xf32, #tpu.memory_space<vmem>>, vector<8x32xf32>
      tpu.vector_store %arg14[%496, %c0_284], %495 {strides = array<i32>} : memref<16x32xf32, #tpu.memory_space<vmem>>, vector<8x32xf32>,
      %c1_i32_285 = arith.constant 1 : i32
      %c8_i32_286 = arith.constant 8 : i32
      %498 = arith.muli %c1_i32_285, %c8_i32_286 : i32
      %499 = tpu.assume_multiple %498, 8 : i32
      %500 = arith.index_cast %499 : i32 to index
      %c0_287 = arith.constant 0 : index
      %501 = vector.load %arg2[%500, %c0_287] : memref<16x32xf32, #tpu.memory_space<vmem>>, vector<8x32xf32>
      %c0_288 = arith.constant 0 : index
      %c0_289 = arith.constant 0 : index
      %502 = vector.load %arg3[%c0_288, %c0_289] : memref<8x32xf32, #tpu.memory_space<vmem>>, vector<8x32xf32>
      %503 = arith.addf %501, %502 : vector<8x32xf32>
      %504 = arith.index_cast %499 : i32 to index
      %c0_290 = arith.constant 0 : index
      %505 = vector.load %arg14[%504, %c0_290] : memref<16x32xf32, #tpu.memory_space<vmem>>, vector<8x32xf32>
      tpu.vector_store %arg14[%504, %c0_290], %503 {strides = array<i32>} : memref<16x32xf32, #tpu.memory_space<vmem>>, vector<8x32xf32>,
      %c2_i32_291 = arith.constant 2 : i32
    } else {
    }
    %c0 = arith.constant 0 : index
    %c0_1 = arith.constant 0 : index
    %3 = vector.load %arg14[%c0, %c0_1] : memref<16x32xf32, #tpu.memory_space<vmem>>, vector<16x32xf32>
    %c0_2 = arith.constant 0 : index
    %c0_3 = arith.constant 0 : index
    %c0_4 = arith.constant 0 : index
    %4 = vector.load %arg9[%c0_2, %c0_3, %c0_4] : memref<1x6x32xf32, #tpu.memory_space<vmem>>, vector<1x6x32xf32>
    %5 = vector.shape_cast %4 : vector<1x6x32xf32> to vector<6x32xf32>
    %6 = vector.extract_strided_slice %5 {offsets = [0, 0], sizes = [1, 32], strides = [1, 1]} : vector<6x32xf32> to vector<1x32xf32>
    %7 = vector.extract_strided_slice %5 {offsets = [1, 0], sizes = [1, 32], strides = [1, 1]} : vector<6x32xf32> to vector<1x32xf32>
    %cst = arith.constant dense<0.000000e+00> : vector<16xf32>
    %8 = vector.multi_reduction <add>, %3, %cst [1] : vector<16x32xf32> to vector<16xf32>
    %9 = vector.shape_cast %8 : vector<16xf32> to vector<16x1xf32>
    %cst_5 = arith.constant 3.200000e+01 : f32
    %10 = vector.broadcast %cst_5 : f32 to vector<16x1xf32>
    %11 = arith.divf %9, %10 : vector<16x1xf32>
    %12 = vector.broadcast %11 : vector<16x1xf32> to vector<16x32xf32>
    %13 = arith.subf %3, %12 : vector<16x32xf32>
    %14 = arith.mulf %13, %13 : vector<16x32xf32>
    %cst_6 = arith.constant dense<0.000000e+00> : vector<16xf32>
    %15 = vector.multi_reduction <add>, %14, %cst_6 [1] : vector<16x32xf32> to vector<16xf32>
    %16 = vector.shape_cast %15 : vector<16xf32> to vector<16x1xf32>
    %cst_7 = arith.constant 3.200000e+01 : f32
    %17 = vector.broadcast %cst_7 : f32 to vector<16x1xf32>
    %18 = arith.divf %16, %17 : vector<16x1xf32>
    %cst_8 = arith.constant 9.99999974E-6 : f32
    %19 = vector.broadcast %cst_8 : f32 to vector<16x1xf32>
    %20 = arith.addf %18, %19 : vector<16x1xf32>
    %21 = math.rsqrt %20 : vector<16x1xf32>
    %22 = vector.broadcast %21 : vector<16x1xf32> to vector<16x32xf32>
    %23 = arith.mulf %13, %22 : vector<16x32xf32>
    %24 = vector.broadcast %6 : vector<1x32xf32> to vector<16x32xf32>
    %25 = arith.mulf %23, %24 : vector<16x32xf32>
    %26 = vector.broadcast %7 : vector<1x32xf32> to vector<16x32xf32>
    %27 = arith.addf %25, %26 : vector<16x32xf32>
    %28 = arith.truncf %27 : vector<16x32xf32> to vector<16x32xbf16>
    %29 = tpu.iota {dimensions = array<i32: 0>} : vector<8x8xi32>
    %30 = tpu.iota {dimensions = array<i32: 1>} : vector<8x8xi32>
    %31 = arith.cmpi sle, %30, %29 : vector<8x8xi32>
    %32 = vector.extract_strided_slice %5 {offsets = [4, 0], sizes = [1, 32], strides = [1, 1]} : vector<6x32xf32> to vector<1x32xf32>
    %33 = vector.shape_cast %32 : vector<1x32xf32> to vector<1x32xf32>
    %34 = vector.broadcast %33 : vector<1x32xf32> to vector<16x32xf32>
    %c0_i32_9 = arith.constant 0 : i32
    %c0_10 = arith.constant 0 : index
    %35 = arith.index_cast %c0_i32_9 : i32 to index
    %c0_11 = arith.constant 0 : index
    %c0_12 = arith.constant 0 : index
    %36 = vector.load %arg6[%c0_10, %35, %c0_11, %c0_12] : memref<1x12x32x8xbf16, #tpu.memory_space<vmem>>, vector<1x1x32x8xbf16>
    %37 = vector.shape_cast %36 : vector<1x1x32x8xbf16> to vector<32x8xbf16>
    %cst_13 = arith.constant dense<0.000000e+00> : vector<16x8xf32>
    %38 = tpu.matmul %28, %37, %cst_13 {dimension_numbers = #tpu.dot_dimension_numbers<[1], [0], [0], [1], [0, 0, 1, 1], [], []>} : vector<16x32xbf16>, vector<32x8xbf16>, vector<16x8xf32> -> vector<16x8xf32>
    %c0_14 = arith.constant 0 : index
    %39 = arith.index_cast %c0_i32_9 : i32 to index
    %c0_15 = arith.constant 0 : index
    %c0_16 = arith.constant 0 : index
    %40 = vector.load %arg7[%c0_14, %39, %c0_15, %c0_16] : memref<1x12x1x8xf32, #tpu.memory_space<vmem>>, vector<1x1x1x8xf32>
    %41 = vector.shape_cast %40 : vector<1x1x1x8xf32> to vector<1x8xf32>
    %42 = vector.broadcast %41 : vector<1x8xf32> to vector<16x8xf32>
    %43 = arith.addf %38, %42 : vector<16x8xf32>
    %c0_17 = arith.constant 0 : index
    %c0_18 = arith.constant 0 : index
    %44 = vector.load %arg15[%c0_17, %c0_18] : memref<16x8xf32, #tpu.memory_space<vmem>>, vector<16x8xf32>
    tpu.vector_store %arg15[%c0_17, %c0_18], %43 {strides = array<i32>} : memref<16x8xf32, #tpu.memory_space<vmem>>, vector<16x8xf32>,
    %c4_i32 = arith.constant 4 : i32
    %45 = arith.addi %c4_i32, %c0_i32_9 : i32
    %c0_19 = arith.constant 0 : index
    %46 = arith.index_cast %45 : i32 to index
    %c0_20 = arith.constant 0 : index
    %c0_21 = arith.constant 0 : index
    %47 = vector.load %arg6[%c0_19, %46, %c0_20, %c0_21] : memref<1x12x32x8xbf16, #tpu.memory_space<vmem>>, vector<1x1x32x8xbf16>
    %48 = vector.shape_cast %47 : vector<1x1x32x8xbf16> to vector<32x8xbf16>
    %cst_22 = arith.constant dense<0.000000e+00> : vector<16x8xf32>
    %49 = tpu.matmul %28, %48, %cst_22 {dimension_numbers = #tpu.dot_dimension_numbers<[1], [0], [0], [1], [0, 0, 1, 1], [], []>} : vector<16x32xbf16>, vector<32x8xbf16>, vector<16x8xf32> -> vector<16x8xf32>
    %c4_i32_23 = arith.constant 4 : i32
    %50 = arith.addi %c4_i32_23, %c0_i32_9 : i32
    %c0_24 = arith.constant 0 : index
    %51 = arith.index_cast %50 : i32 to index
    %c0_25 = arith.constant 0 : index
    %c0_26 = arith.constant 0 : index
    %52 = vector.load %arg7[%c0_24, %51, %c0_25, %c0_26] : memref<1x12x1x8xf32, #tpu.memory_space<vmem>>, vector<1x1x1x8xf32>
    %53 = vector.shape_cast %52 : vector<1x1x1x8xf32> to vector<1x8xf32>
    %54 = vector.broadcast %53 : vector<1x8xf32> to vector<16x8xf32>
    %55 = arith.addf %49, %54 : vector<16x8xf32>
    %c0_27 = arith.constant 0 : index
    %c0_28 = arith.constant 0 : index
    %56 = vector.load %arg16[%c0_27, %c0_28] : memref<16x8xf32, #tpu.memory_space<vmem>>, vector<16x8xf32>
    tpu.vector_store %arg16[%c0_27, %c0_28], %55 {strides = array<i32>} : memref<16x8xf32, #tpu.memory_space<vmem>>, vector<16x8xf32>,
    %c8_i32 = arith.constant 8 : i32
    %57 = arith.addi %c8_i32, %c0_i32_9 : i32
    %c0_29 = arith.constant 0 : index
    %58 = arith.index_cast %57 : i32 to index
    %c0_30 = arith.constant 0 : index
    %c0_31 = arith.constant 0 : index
    %59 = vector.load %arg6[%c0_29, %58, %c0_30, %c0_31] : memref<1x12x32x8xbf16, #tpu.memory_space<vmem>>, vector<1x1x32x8xbf16>
    %60 = vector.shape_cast %59 : vector<1x1x32x8xbf16> to vector<32x8xbf16>
    %cst_32 = arith.constant dense<0.000000e+00> : vector<16x8xf32>
    %61 = tpu.matmul %28, %60, %cst_32 {dimension_numbers = #tpu.dot_dimension_numbers<[1], [0], [0], [1], [0, 0, 1, 1], [], []>} : vector<16x32xbf16>, vector<32x8xbf16>, vector<16x8xf32> -> vector<16x8xf32>
    %c8_i32_33 = arith.constant 8 : i32
    %62 = arith.addi %c8_i32_33, %c0_i32_9 : i32
    %c0_34 = arith.constant 0 : index
    %63 = arith.index_cast %62 : i32 to index
    %c0_35 = arith.constant 0 : index
    %c0_36 = arith.constant 0 : index
    %64 = vector.load %arg7[%c0_34, %63, %c0_35, %c0_36] : memref<1x12x1x8xf32, #tpu.memory_space<vmem>>, vector<1x1x1x8xf32>
    %65 = vector.shape_cast %64 : vector<1x1x1x8xf32> to vector<1x8xf32>
    %66 = vector.broadcast %65 : vector<1x8xf32> to vector<16x8xf32>
    %67 = arith.addf %61, %66 : vector<16x8xf32>
    %c0_37 = arith.constant 0 : index
    %c0_38 = arith.constant 0 : index
    %68 = vector.load %arg17[%c0_37, %c0_38] : memref<16x8xf32, #tpu.memory_space<vmem>>, vector<16x8xf32>
    tpu.vector_store %arg17[%c0_37, %c0_38], %67 {strides = array<i32>} : memref<16x8xf32, #tpu.memory_space<vmem>>, vector<16x8xf32>,
    %c0_i32_39 = arith.constant 0 : i32
    %c8_i32_40 = arith.constant 8 : i32
    %69 = arith.muli %c0_i32_39, %c8_i32_40 : i32
    %70 = tpu.assume_multiple %69, 8 : i32
    %71 = arith.index_cast %70 : i32 to index
    %c0_41 = arith.constant 0 : index
    %72 = vector.load %arg15[%71, %c0_41] : memref<16x8xf32, #tpu.memory_space<vmem>>, vector<8x8xf32>
    %73 = arith.truncf %72 : vector<8x8xf32> to vector<8x8xbf16>
    %74 = arith.index_cast %70 : i32 to index
    %c0_42 = arith.constant 0 : index
    %75 = vector.load %arg16[%74, %c0_42] : memref<16x8xf32, #tpu.memory_space<vmem>>, vector<8x8xf32>
    %76 = arith.truncf %75 : vector<8x8xf32> to vector<8x8xbf16>
    %77 = arith.index_cast %70 : i32 to index
    %c0_43 = arith.constant 0 : index
    %78 = vector.load %arg17[%77, %c0_43] : memref<16x8xf32, #tpu.memory_space<vmem>>, vector<8x8xf32>
    %79 = arith.truncf %78 : vector<8x8xf32> to vector<8x8xbf16>
    %cst_44 = arith.constant dense<0.000000e+00> : vector<8x8xf32>
    %80 = tpu.matmul %73, %76, %cst_44 {dimension_numbers = #tpu.dot_dimension_numbers<[1], [1], [0], [0], [0, 0, 1, 0], [], []>} : vector<8x8xbf16>, vector<8x8xbf16>, vector<8x8xf32> -> vector<8x8xf32>
    %cst_45 = arith.constant 0.353553385 : f32
    %81 = vector.broadcast %cst_45 : f32 to vector<8x8xf32>
    %82 = arith.mulf %80, %81 : vector<8x8xf32>
    %cst_46 = arith.constant -1.000000e+09 : f32
    %83 = vector.broadcast %cst_46 : f32 to vector<8x8xf32>
    %84 = arith.select %31, %82, %83 : vector<8x8xi1>, vector<8x8xf32>
    %cst_47 = arith.constant dense<0xFF800000> : vector<8xf32>
    %85 = vector.multi_reduction <maximumf>, %84, %cst_47 [1] : vector<8x8xf32> to vector<8xf32>
    %86 = vector.shape_cast %85 : vector<8xf32> to vector<8x1xf32>
    %87 = vector.broadcast %86 : vector<8x1xf32> to vector<8x8xf32>
    %88 = arith.subf %84, %87 : vector<8x8xf32>
    %89 = math.exp %88 : vector<8x8xf32>
    %cst_48 = arith.constant dense<0.000000e+00> : vector<8xf32>
    %90 = vector.multi_reduction <add>, %89, %cst_48 [1] : vector<8x8xf32> to vector<8xf32>
    %91 = vector.shape_cast %90 : vector<8xf32> to vector<8x1xf32>
    %92 = tpu.reciprocal %91 {approx = true} : vector<8x1xf32> -> vector<8x1xf32>
    %93 = vector.broadcast %92 : vector<8x1xf32> to vector<8x8xf32>
    %94 = arith.mulf %89, %93 : vector<8x8xf32>
    %95 = arith.truncf %94 : vector<8x8xf32> to vector<8x8xbf16>
    %cst_49 = arith.constant dense<0.000000e+00> : vector<8x8xf32>
    %96 = tpu.matmul %95, %79, %cst_49 {dimension_numbers = #tpu.dot_dimension_numbers<[1], [0], [0], [1], [0, 0, 1, 1], [], []>} : vector<8x8xbf16>, vector<8x8xbf16>, vector<8x8xf32> -> vector<8x8xf32>
    %97 = arith.index_cast %70 : i32 to index
    %c0_50 = arith.constant 0 : index
    %98 = vector.load %arg18[%97, %c0_50] : memref<16x8xf32, #tpu.memory_space<vmem>>, vector<8x8xf32>
    tpu.vector_store %arg18[%97, %c0_50], %96 {strides = array<i32>} : memref<16x8xf32, #tpu.memory_space<vmem>>, vector<8x8xf32>,
    %c1_i32 = arith.constant 1 : i32
    %c8_i32_51 = arith.constant 8 : i32
    %99 = arith.muli %c1_i32, %c8_i32_51 : i32
    %100 = tpu.assume_multiple %99, 8 : i32
    %101 = arith.index_cast %100 : i32 to index
    %c0_52 = arith.constant 0 : index
    %102 = vector.load %arg15[%101, %c0_52] : memref<16x8xf32, #tpu.memory_space<vmem>>, vector<8x8xf32>
    %103 = arith.truncf %102 : vector<8x8xf32> to vector<8x8xbf16>
    %104 = arith.index_cast %100 : i32 to index
    %c0_53 = arith.constant 0 : index
    %105 = vector.load %arg16[%104, %c0_53] : memref<16x8xf32, #tpu.memory_space<vmem>>, vector<8x8xf32>
    %106 = arith.truncf %105 : vector<8x8xf32> to vector<8x8xbf16>
    %107 = arith.index_cast %100 : i32 to index
    %c0_54 = arith.constant 0 : index
    %108 = vector.load %arg17[%107, %c0_54] : memref<16x8xf32, #tpu.memory_space<vmem>>, vector<8x8xf32>
    %109 = arith.truncf %108 : vector<8x8xf32> to vector<8x8xbf16>
    %cst_55 = arith.constant dense<0.000000e+00> : vector<8x8xf32>
    %110 = tpu.matmul %103, %106, %cst_55 {dimension_numbers = #tpu.dot_dimension_numbers<[1], [1], [0], [0], [0, 0, 1, 0], [], []>} : vector<8x8xbf16>, vector<8x8xbf16>, vector<8x8xf32> -> vector<8x8xf32>
    %cst_56 = arith.constant 0.353553385 : f32
    %111 = vector.broadcast %cst_56 : f32 to vector<8x8xf32>
    %112 = arith.mulf %110, %111 : vector<8x8xf32>
    %cst_57 = arith.constant -1.000000e+09 : f32
    %113 = vector.broadcast %cst_57 : f32 to vector<8x8xf32>
    %114 = arith.select %31, %112, %113 : vector<8x8xi1>, vector<8x8xf32>
    %cst_58 = arith.constant dense<0xFF800000> : vector<8xf32>
    %115 = vector.multi_reduction <maximumf>, %114, %cst_58 [1] : vector<8x8xf32> to vector<8xf32>
    %116 = vector.shape_cast %115 : vector<8xf32> to vector<8x1xf32>
    %117 = vector.broadcast %116 : vector<8x1xf32> to vector<8x8xf32>
    %118 = arith.subf %114, %117 : vector<8x8xf32>
    %119 = math.exp %118 : vector<8x8xf32>
    %cst_59 = arith.constant dense<0.000000e+00> : vector<8xf32>
    %120 = vector.multi_reduction <add>, %119, %cst_59 [1] : vector<8x8xf32> to vector<8xf32>
    %121 = vector.shape_cast %120 : vector<8xf32> to vector<8x1xf32>
    %122 = tpu.reciprocal %121 {approx = true} : vector<8x1xf32> -> vector<8x1xf32>
    %123 = vector.broadcast %122 : vector<8x1xf32> to vector<8x8xf32>
    %124 = arith.mulf %119, %123 : vector<8x8xf32>
    %125 = arith.truncf %124 : vector<8x8xf32> to vector<8x8xbf16>
    %cst_60 = arith.constant dense<0.000000e+00> : vector<8x8xf32>
    %126 = tpu.matmul %125, %109, %cst_60 {dimension_numbers = #tpu.dot_dimension_numbers<[1], [0], [0], [1], [0, 0, 1, 1], [], []>} : vector<8x8xbf16>, vector<8x8xbf16>, vector<8x8xf32> -> vector<8x8xf32>
    %127 = arith.index_cast %100 : i32 to index
    %c0_61 = arith.constant 0 : index
    %128 = vector.load %arg18[%127, %c0_61] : memref<16x8xf32, #tpu.memory_space<vmem>>, vector<8x8xf32>
    tpu.vector_store %arg18[%127, %c0_61], %126 {strides = array<i32>} : memref<16x8xf32, #tpu.memory_space<vmem>>, vector<8x8xf32>,
    %c2_i32 = arith.constant 2 : i32
    %c0_62 = arith.constant 0 : index
    %c0_63 = arith.constant 0 : index
    %129 = vector.load %arg18[%c0_62, %c0_63] : memref<16x8xf32, #tpu.memory_space<vmem>>, vector<16x8xf32>
    %130 = arith.truncf %129 : vector<16x8xf32> to vector<16x8xbf16>
    %c0_64 = arith.constant 0 : index
    %131 = arith.index_cast %c0_i32_9 : i32 to index
    %c0_65 = arith.constant 0 : index
    %c0_66 = arith.constant 0 : index
    %132 = vector.load %arg8[%c0_64, %131, %c0_65, %c0_66] : memref<1x4x8x32xbf16, #tpu.memory_space<vmem>>, vector<1x1x8x32xbf16>
    %133 = vector.shape_cast %132 : vector<1x1x8x32xbf16> to vector<8x32xbf16>
    %cst_67 = arith.constant dense<0.000000e+00> : vector<16x32xf32>
    %134 = tpu.matmul %130, %133, %cst_67 {dimension_numbers = #tpu.dot_dimension_numbers<[1], [0], [0], [1], [0, 0, 1, 1], [], []>} : vector<16x8xbf16>, vector<8x32xbf16>, vector<16x32xf32> -> vector<16x32xf32>
    %135 = arith.addf %34, %134 : vector<16x32xf32>
    %c1_i32_68 = arith.constant 1 : i32
    %c0_69 = arith.constant 0 : index
    %136 = arith.index_cast %c1_i32_68 : i32 to index
    %c0_70 = arith.constant 0 : index
    %c0_71 = arith.constant 0 : index
    %137 = vector.load %arg6[%c0_69, %136, %c0_70, %c0_71] : memref<1x12x32x8xbf16, #tpu.memory_space<vmem>>, vector<1x1x32x8xbf16>
    %138 = vector.shape_cast %137 : vector<1x1x32x8xbf16> to vector<32x8xbf16>
    %cst_72 = arith.constant dense<0.000000e+00> : vector<16x8xf32>
    %139 = tpu.matmul %28, %138, %cst_72 {dimension_numbers = #tpu.dot_dimension_numbers<[1], [0], [0], [1], [0, 0, 1, 1], [], []>} : vector<16x32xbf16>, vector<32x8xbf16>, vector<16x8xf32> -> vector<16x8xf32>
    %c0_73 = arith.constant 0 : index
    %140 = arith.index_cast %c1_i32_68 : i32 to index
    %c0_74 = arith.constant 0 : index
    %c0_75 = arith.constant 0 : index
    %141 = vector.load %arg7[%c0_73, %140, %c0_74, %c0_75] : memref<1x12x1x8xf32, #tpu.memory_space<vmem>>, vector<1x1x1x8xf32>
    %142 = vector.shape_cast %141 : vector<1x1x1x8xf32> to vector<1x8xf32>
    %143 = vector.broadcast %142 : vector<1x8xf32> to vector<16x8xf32>
    %144 = arith.addf %139, %143 : vector<16x8xf32>
    %c0_76 = arith.constant 0 : index
    %c0_77 = arith.constant 0 : index
    %145 = vector.load %arg15[%c0_76, %c0_77] : memref<16x8xf32, #tpu.memory_space<vmem>>, vector<16x8xf32>
    tpu.vector_store %arg15[%c0_76, %c0_77], %144 {strides = array<i32>} : memref<16x8xf32, #tpu.memory_space<vmem>>, vector<16x8xf32>,
    %c4_i32_78 = arith.constant 4 : i32
    %146 = arith.addi %c4_i32_78, %c1_i32_68 : i32
    %c0_79 = arith.constant 0 : index
    %147 = arith.index_cast %146 : i32 to index
    %c0_80 = arith.constant 0 : index
    %c0_81 = arith.constant 0 : index
    %148 = vector.load %arg6[%c0_79, %147, %c0_80, %c0_81] : memref<1x12x32x8xbf16, #tpu.memory_space<vmem>>, vector<1x1x32x8xbf16>
    %149 = vector.shape_cast %148 : vector<1x1x32x8xbf16> to vector<32x8xbf16>
    %cst_82 = arith.constant dense<0.000000e+00> : vector<16x8xf32>
    %150 = tpu.matmul %28, %149, %cst_82 {dimension_numbers = #tpu.dot_dimension_numbers<[1], [0], [0], [1], [0, 0, 1, 1], [], []>} : vector<16x32xbf16>, vector<32x8xbf16>, vector<16x8xf32> -> vector<16x8xf32>
    %c4_i32_83 = arith.constant 4 : i32
    %151 = arith.addi %c4_i32_83, %c1_i32_68 : i32
    %c0_84 = arith.constant 0 : index
    %152 = arith.index_cast %151 : i32 to index
    %c0_85 = arith.constant 0 : index
    %c0_86 = arith.constant 0 : index
    %153 = vector.load %arg7[%c0_84, %152, %c0_85, %c0_86] : memref<1x12x1x8xf32, #tpu.memory_space<vmem>>, vector<1x1x1x8xf32>
    %154 = vector.shape_cast %153 : vector<1x1x1x8xf32> to vector<1x8xf32>
    %155 = vector.broadcast %154 : vector<1x8xf32> to vector<16x8xf32>
    %156 = arith.addf %150, %155 : vector<16x8xf32>
    %c0_87 = arith.constant 0 : index
    %c0_88 = arith.constant 0 : index
    %157 = vector.load %arg16[%c0_87, %c0_88] : memref<16x8xf32, #tpu.memory_space<vmem>>, vector<16x8xf32>
    tpu.vector_store %arg16[%c0_87, %c0_88], %156 {strides = array<i32>} : memref<16x8xf32, #tpu.memory_space<vmem>>, vector<16x8xf32>,
    %c8_i32_89 = arith.constant 8 : i32
    %158 = arith.addi %c8_i32_89, %c1_i32_68 : i32
    %c0_90 = arith.constant 0 : index
    %159 = arith.index_cast %158 : i32 to index
    %c0_91 = arith.constant 0 : index
    %c0_92 = arith.constant 0 : index
    %160 = vector.load %arg6[%c0_90, %159, %c0_91, %c0_92] : memref<1x12x32x8xbf16, #tpu.memory_space<vmem>>, vector<1x1x32x8xbf16>
    %161 = vector.shape_cast %160 : vector<1x1x32x8xbf16> to vector<32x8xbf16>
    %cst_93 = arith.constant dense<0.000000e+00> : vector<16x8xf32>
    %162 = tpu.matmul %28, %161, %cst_93 {dimension_numbers = #tpu.dot_dimension_numbers<[1], [0], [0], [1], [0, 0, 1, 1], [], []>} : vector<16x32xbf16>, vector<32x8xbf16>, vector<16x8xf32> -> vector<16x8xf32>
    %c8_i32_94 = arith.constant 8 : i32
    %163 = arith.addi %c8_i32_94, %c1_i32_68 : i32
    %c0_95 = arith.constant 0 : index
    %164 = arith.index_cast %163 : i32 to index
    %c0_96 = arith.constant 0 : index
    %c0_97 = arith.constant 0 : index
    %165 = vector.load %arg7[%c0_95, %164, %c0_96, %c0_97] : memref<1x12x1x8xf32, #tpu.memory_space<vmem>>, vector<1x1x1x8xf32>
    %166 = vector.shape_cast %165 : vector<1x1x1x8xf32> to vector<1x8xf32>
    %167 = vector.broadcast %166 : vector<1x8xf32> to vector<16x8xf32>
    %168 = arith.addf %162, %167 : vector<16x8xf32>
    %c0_98 = arith.constant 0 : index
    %c0_99 = arith.constant 0 : index
    %169 = vector.load %arg17[%c0_98, %c0_99] : memref<16x8xf32, #tpu.memory_space<vmem>>, vector<16x8xf32>
    tpu.vector_store %arg17[%c0_98, %c0_99], %168 {strides = array<i32>} : memref<16x8xf32, #tpu.memory_space<vmem>>, vector<16x8xf32>,
    %c0_i32_100 = arith.constant 0 : i32
    %c8_i32_101 = arith.constant 8 : i32
    %170 = arith.muli %c0_i32_100, %c8_i32_101 : i32
    %171 = tpu.assume_multiple %170, 8 : i32
    %172 = arith.index_cast %171 : i32 to index
    %c0_102 = arith.constant 0 : index
    %173 = vector.load %arg15[%172, %c0_102] : memref<16x8xf32, #tpu.memory_space<vmem>>, vector<8x8xf32>
    %174 = arith.truncf %173 : vector<8x8xf32> to vector<8x8xbf16>
    %175 = arith.index_cast %171 : i32 to index
    %c0_103 = arith.constant 0 : index
    %176 = vector.load %arg16[%175, %c0_103] : memref<16x8xf32, #tpu.memory_space<vmem>>, vector<8x8xf32>
    %177 = arith.truncf %176 : vector<8x8xf32> to vector<8x8xbf16>
    %178 = arith.index_cast %171 : i32 to index
    %c0_104 = arith.constant 0 : index
    %179 = vector.load %arg17[%178, %c0_104] : memref<16x8xf32, #tpu.memory_space<vmem>>, vector<8x8xf32>
    %180 = arith.truncf %179 : vector<8x8xf32> to vector<8x8xbf16>
    %cst_105 = arith.constant dense<0.000000e+00> : vector<8x8xf32>
    %181 = tpu.matmul %174, %177, %cst_105 {dimension_numbers = #tpu.dot_dimension_numbers<[1], [1], [0], [0], [0, 0, 1, 0], [], []>} : vector<8x8xbf16>, vector<8x8xbf16>, vector<8x8xf32> -> vector<8x8xf32>
    %cst_106 = arith.constant 0.353553385 : f32
    %182 = vector.broadcast %cst_106 : f32 to vector<8x8xf32>
    %183 = arith.mulf %181, %182 : vector<8x8xf32>
    %cst_107 = arith.constant -1.000000e+09 : f32
    %184 = vector.broadcast %cst_107 : f32 to vector<8x8xf32>
    %185 = arith.select %31, %183, %184 : vector<8x8xi1>, vector<8x8xf32>
    %cst_108 = arith.constant dense<0xFF800000> : vector<8xf32>
    %186 = vector.multi_reduction <maximumf>, %185, %cst_108 [1] : vector<8x8xf32> to vector<8xf32>
    %187 = vector.shape_cast %186 : vector<8xf32> to vector<8x1xf32>
    %188 = vector.broadcast %187 : vector<8x1xf32> to vector<8x8xf32>
    %189 = arith.subf %185, %188 : vector<8x8xf32>
    %190 = math.exp %189 : vector<8x8xf32>
    %cst_109 = arith.constant dense<0.000000e+00> : vector<8xf32>
    %191 = vector.multi_reduction <add>, %190, %cst_109 [1] : vector<8x8xf32> to vector<8xf32>
    %192 = vector.shape_cast %191 : vector<8xf32> to vector<8x1xf32>
    %193 = tpu.reciprocal %192 {approx = true} : vector<8x1xf32> -> vector<8x1xf32>
    %194 = vector.broadcast %193 : vector<8x1xf32> to vector<8x8xf32>
    %195 = arith.mulf %190, %194 : vector<8x8xf32>
    %196 = arith.truncf %195 : vector<8x8xf32> to vector<8x8xbf16>
    %cst_110 = arith.constant dense<0.000000e+00> : vector<8x8xf32>
    %197 = tpu.matmul %196, %180, %cst_110 {dimension_numbers = #tpu.dot_dimension_numbers<[1], [0], [0], [1], [0, 0, 1, 1], [], []>} : vector<8x8xbf16>, vector<8x8xbf16>, vector<8x8xf32> -> vector<8x8xf32>
    %198 = arith.index_cast %171 : i32 to index
    %c0_111 = arith.constant 0 : index
    %199 = vector.load %arg18[%198, %c0_111] : memref<16x8xf32, #tpu.memory_space<vmem>>, vector<8x8xf32>
    tpu.vector_store %arg18[%198, %c0_111], %197 {strides = array<i32>} : memref<16x8xf32, #tpu.memory_space<vmem>>, vector<8x8xf32>,
    %c1_i32_112 = arith.constant 1 : i32
    %c8_i32_113 = arith.constant 8 : i32
    %200 = arith.muli %c1_i32_112, %c8_i32_113 : i32
    %201 = tpu.assume_multiple %200, 8 : i32
    %202 = arith.index_cast %201 : i32 to index
    %c0_114 = arith.constant 0 : index
    %203 = vector.load %arg15[%202, %c0_114] : memref<16x8xf32, #tpu.memory_space<vmem>>, vector<8x8xf32>
    %204 = arith.truncf %203 : vector<8x8xf32> to vector<8x8xbf16>
    %205 = arith.index_cast %201 : i32 to index
    %c0_115 = arith.constant 0 : index
    %206 = vector.load %arg16[%205, %c0_115] : memref<16x8xf32, #tpu.memory_space<vmem>>, vector<8x8xf32>
    %207 = arith.truncf %206 : vector<8x8xf32> to vector<8x8xbf16>
    %208 = arith.index_cast %201 : i32 to index
    %c0_116 = arith.constant 0 : index
    %209 = vector.load %arg17[%208, %c0_116] : memref<16x8xf32, #tpu.memory_space<vmem>>, vector<8x8xf32>
    %210 = arith.truncf %209 : vector<8x8xf32> to vector<8x8xbf16>
    %cst_117 = arith.constant dense<0.000000e+00> : vector<8x8xf32>
    %211 = tpu.matmul %204, %207, %cst_117 {dimension_numbers = #tpu.dot_dimension_numbers<[1], [1], [0], [0], [0, 0, 1, 0], [], []>} : vector<8x8xbf16>, vector<8x8xbf16>, vector<8x8xf32> -> vector<8x8xf32>
    %cst_118 = arith.constant 0.353553385 : f32
    %212 = vector.broadcast %cst_118 : f32 to vector<8x8xf32>
    %213 = arith.mulf %211, %212 : vector<8x8xf32>
    %cst_119 = arith.constant -1.000000e+09 : f32
    %214 = vector.broadcast %cst_119 : f32 to vector<8x8xf32>
    %215 = arith.select %31, %213, %214 : vector<8x8xi1>, vector<8x8xf32>
    %cst_120 = arith.constant dense<0xFF800000> : vector<8xf32>
    %216 = vector.multi_reduction <maximumf>, %215, %cst_120 [1] : vector<8x8xf32> to vector<8xf32>
    %217 = vector.shape_cast %216 : vector<8xf32> to vector<8x1xf32>
    %218 = vector.broadcast %217 : vector<8x1xf32> to vector<8x8xf32>
    %219 = arith.subf %215, %218 : vector<8x8xf32>
    %220 = math.exp %219 : vector<8x8xf32>
    %cst_121 = arith.constant dense<0.000000e+00> : vector<8xf32>
    %221 = vector.multi_reduction <add>, %220, %cst_121 [1] : vector<8x8xf32> to vector<8xf32>
    %222 = vector.shape_cast %221 : vector<8xf32> to vector<8x1xf32>
    %223 = tpu.reciprocal %222 {approx = true} : vector<8x1xf32> -> vector<8x1xf32>
    %224 = vector.broadcast %223 : vector<8x1xf32> to vector<8x8xf32>
    %225 = arith.mulf %220, %224 : vector<8x8xf32>
    %226 = arith.truncf %225 : vector<8x8xf32> to vector<8x8xbf16>
    %cst_122 = arith.constant dense<0.000000e+00> : vector<8x8xf32>
    %227 = tpu.matmul %226, %210, %cst_122 {dimension_numbers = #tpu.dot_dimension_numbers<[1], [0], [0], [1], [0, 0, 1, 1], [], []>} : vector<8x8xbf16>, vector<8x8xbf16>, vector<8x8xf32> -> vector<8x8xf32>
    %228 = arith.index_cast %201 : i32 to index
    %c0_123 = arith.constant 0 : index
    %229 = vector.load %arg18[%228, %c0_123] : memref<16x8xf32, #tpu.memory_space<vmem>>, vector<8x8xf32>
    tpu.vector_store %arg18[%228, %c0_123], %227 {strides = array<i32>} : memref<16x8xf32, #tpu.memory_space<vmem>>, vector<8x8xf32>,
    %c2_i32_124 = arith.constant 2 : i32
    %c0_125 = arith.constant 0 : index
    %c0_126 = arith.constant 0 : index
    %230 = vector.load %arg18[%c0_125, %c0_126] : memref<16x8xf32, #tpu.memory_space<vmem>>, vector<16x8xf32>
    %231 = arith.truncf %230 : vector<16x8xf32> to vector<16x8xbf16>
    %c0_127 = arith.constant 0 : index
    %232 = arith.index_cast %c1_i32_68 : i32 to index
    %c0_128 = arith.constant 0 : index
    %c0_129 = arith.constant 0 : index
    %233 = vector.load %arg8[%c0_127, %232, %c0_128, %c0_129] : memref<1x4x8x32xbf16, #tpu.memory_space<vmem>>, vector<1x1x8x32xbf16>
    %234 = vector.shape_cast %233 : vector<1x1x8x32xbf16> to vector<8x32xbf16>
    %cst_130 = arith.constant dense<0.000000e+00> : vector<16x32xf32>
    %235 = tpu.matmul %231, %234, %cst_130 {dimension_numbers = #tpu.dot_dimension_numbers<[1], [0], [0], [1], [0, 0, 1, 1], [], []>} : vector<16x8xbf16>, vector<8x32xbf16>, vector<16x32xf32> -> vector<16x32xf32>
    %236 = arith.addf %135, %235 : vector<16x32xf32>
    %c2_i32_131 = arith.constant 2 : i32
    %c0_132 = arith.constant 0 : index
    %237 = arith.index_cast %c2_i32_131 : i32 to index
    %c0_133 = arith.constant 0 : index
    %c0_134 = arith.constant 0 : index
    %238 = vector.load %arg6[%c0_132, %237, %c0_133, %c0_134] : memref<1x12x32x8xbf16, #tpu.memory_space<vmem>>, vector<1x1x32x8xbf16>
    %239 = vector.shape_cast %238 : vector<1x1x32x8xbf16> to vector<32x8xbf16>
    %cst_135 = arith.constant dense<0.000000e+00> : vector<16x8xf32>
    %240 = tpu.matmul %28, %239, %cst_135 {dimension_numbers = #tpu.dot_dimension_numbers<[1], [0], [0], [1], [0, 0, 1, 1], [], []>} : vector<16x32xbf16>, vector<32x8xbf16>, vector<16x8xf32> -> vector<16x8xf32>
    %c0_136 = arith.constant 0 : index
    %241 = arith.index_cast %c2_i32_131 : i32 to index
    %c0_137 = arith.constant 0 : index
    %c0_138 = arith.constant 0 : index
    %242 = vector.load %arg7[%c0_136, %241, %c0_137, %c0_138] : memref<1x12x1x8xf32, #tpu.memory_space<vmem>>, vector<1x1x1x8xf32>
    %243 = vector.shape_cast %242 : vector<1x1x1x8xf32> to vector<1x8xf32>
    %244 = vector.broadcast %243 : vector<1x8xf32> to vector<16x8xf32>
    %245 = arith.addf %240, %244 : vector<16x8xf32>
    %c0_139 = arith.constant 0 : index
    %c0_140 = arith.constant 0 : index
    %246 = vector.load %arg15[%c0_139, %c0_140] : memref<16x8xf32, #tpu.memory_space<vmem>>, vector<16x8xf32>
    tpu.vector_store %arg15[%c0_139, %c0_140], %245 {strides = array<i32>} : memref<16x8xf32, #tpu.memory_space<vmem>>, vector<16x8xf32>,
    %c4_i32_141 = arith.constant 4 : i32
    %247 = arith.addi %c4_i32_141, %c2_i32_131 : i32
    %c0_142 = arith.constant 0 : index
    %248 = arith.index_cast %247 : i32 to index
    %c0_143 = arith.constant 0 : index
    %c0_144 = arith.constant 0 : index
    %249 = vector.load %arg6[%c0_142, %248, %c0_143, %c0_144] : memref<1x12x32x8xbf16, #tpu.memory_space<vmem>>, vector<1x1x32x8xbf16>
    %250 = vector.shape_cast %249 : vector<1x1x32x8xbf16> to vector<32x8xbf16>
    %cst_145 = arith.constant dense<0.000000e+00> : vector<16x8xf32>
    %251 = tpu.matmul %28, %250, %cst_145 {dimension_numbers = #tpu.dot_dimension_numbers<[1], [0], [0], [1], [0, 0, 1, 1], [], []>} : vector<16x32xbf16>, vector<32x8xbf16>, vector<16x8xf32> -> vector<16x8xf32>
    %c4_i32_146 = arith.constant 4 : i32
    %252 = arith.addi %c4_i32_146, %c2_i32_131 : i32
    %c0_147 = arith.constant 0 : index
    %253 = arith.index_cast %252 : i32 to index
    %c0_148 = arith.constant 0 : index
    %c0_149 = arith.constant 0 : index
    %254 = vector.load %arg7[%c0_147, %253, %c0_148, %c0_149] : memref<1x12x1x8xf32, #tpu.memory_space<vmem>>, vector<1x1x1x8xf32>
    %255 = vector.shape_cast %254 : vector<1x1x1x8xf32> to vector<1x8xf32>
    %256 = vector.broadcast %255 : vector<1x8xf32> to vector<16x8xf32>
    %257 = arith.addf %251, %256 : vector<16x8xf32>
    %c0_150 = arith.constant 0 : index
    %c0_151 = arith.constant 0 : index
    %258 = vector.load %arg16[%c0_150, %c0_151] : memref<16x8xf32, #tpu.memory_space<vmem>>, vector<16x8xf32>
    tpu.vector_store %arg16[%c0_150, %c0_151], %257 {strides = array<i32>} : memref<16x8xf32, #tpu.memory_space<vmem>>, vector<16x8xf32>,
    %c8_i32_152 = arith.constant 8 : i32
    %259 = arith.addi %c8_i32_152, %c2_i32_131 : i32
    %c0_153 = arith.constant 0 : index
    %260 = arith.index_cast %259 : i32 to index
    %c0_154 = arith.constant 0 : index
    %c0_155 = arith.constant 0 : index
    %261 = vector.load %arg6[%c0_153, %260, %c0_154, %c0_155] : memref<1x12x32x8xbf16, #tpu.memory_space<vmem>>, vector<1x1x32x8xbf16>
    %262 = vector.shape_cast %261 : vector<1x1x32x8xbf16> to vector<32x8xbf16>
    %cst_156 = arith.constant dense<0.000000e+00> : vector<16x8xf32>
    %263 = tpu.matmul %28, %262, %cst_156 {dimension_numbers = #tpu.dot_dimension_numbers<[1], [0], [0], [1], [0, 0, 1, 1], [], []>} : vector<16x32xbf16>, vector<32x8xbf16>, vector<16x8xf32> -> vector<16x8xf32>
    %c8_i32_157 = arith.constant 8 : i32
    %264 = arith.addi %c8_i32_157, %c2_i32_131 : i32
    %c0_158 = arith.constant 0 : index
    %265 = arith.index_cast %264 : i32 to index
    %c0_159 = arith.constant 0 : index
    %c0_160 = arith.constant 0 : index
    %266 = vector.load %arg7[%c0_158, %265, %c0_159, %c0_160] : memref<1x12x1x8xf32, #tpu.memory_space<vmem>>, vector<1x1x1x8xf32>
    %267 = vector.shape_cast %266 : vector<1x1x1x8xf32> to vector<1x8xf32>
    %268 = vector.broadcast %267 : vector<1x8xf32> to vector<16x8xf32>
    %269 = arith.addf %263, %268 : vector<16x8xf32>
    %c0_161 = arith.constant 0 : index
    %c0_162 = arith.constant 0 : index
    %270 = vector.load %arg17[%c0_161, %c0_162] : memref<16x8xf32, #tpu.memory_space<vmem>>, vector<16x8xf32>
    tpu.vector_store %arg17[%c0_161, %c0_162], %269 {strides = array<i32>} : memref<16x8xf32, #tpu.memory_space<vmem>>, vector<16x8xf32>,
    %c0_i32_163 = arith.constant 0 : i32
    %c8_i32_164 = arith.constant 8 : i32
    %271 = arith.muli %c0_i32_163, %c8_i32_164 : i32
    %272 = tpu.assume_multiple %271, 8 : i32
    %273 = arith.index_cast %272 : i32 to index
    %c0_165 = arith.constant 0 : index
    %274 = vector.load %arg15[%273, %c0_165] : memref<16x8xf32, #tpu.memory_space<vmem>>, vector<8x8xf32>
    %275 = arith.truncf %274 : vector<8x8xf32> to vector<8x8xbf16>
    %276 = arith.index_cast %272 : i32 to index
    %c0_166 = arith.constant 0 : index
    %277 = vector.load %arg16[%276, %c0_166] : memref<16x8xf32, #tpu.memory_space<vmem>>, vector<8x8xf32>
    %278 = arith.truncf %277 : vector<8x8xf32> to vector<8x8xbf16>
    %279 = arith.index_cast %272 : i32 to index
    %c0_167 = arith.constant 0 : index
    %280 = vector.load %arg17[%279, %c0_167] : memref<16x8xf32, #tpu.memory_space<vmem>>, vector<8x8xf32>
    %281 = arith.truncf %280 : vector<8x8xf32> to vector<8x8xbf16>
    %cst_168 = arith.constant dense<0.000000e+00> : vector<8x8xf32>
    %282 = tpu.matmul %275, %278, %cst_168 {dimension_numbers = #tpu.dot_dimension_numbers<[1], [1], [0], [0], [0, 0, 1, 0], [], []>} : vector<8x8xbf16>, vector<8x8xbf16>, vector<8x8xf32> -> vector<8x8xf32>
    %cst_169 = arith.constant 0.353553385 : f32
    %283 = vector.broadcast %cst_169 : f32 to vector<8x8xf32>
    %284 = arith.mulf %282, %283 : vector<8x8xf32>
    %cst_170 = arith.constant -1.000000e+09 : f32
    %285 = vector.broadcast %cst_170 : f32 to vector<8x8xf32>
    %286 = arith.select %31, %284, %285 : vector<8x8xi1>, vector<8x8xf32>
    %cst_171 = arith.constant dense<0xFF800000> : vector<8xf32>
    %287 = vector.multi_reduction <maximumf>, %286, %cst_171 [1] : vector<8x8xf32> to vector<8xf32>
    %288 = vector.shape_cast %287 : vector<8xf32> to vector<8x1xf32>
    %289 = vector.broadcast %288 : vector<8x1xf32> to vector<8x8xf32>
    %290 = arith.subf %286, %289 : vector<8x8xf32>
    %291 = math.exp %290 : vector<8x8xf32>
    %cst_172 = arith.constant dense<0.000000e+00> : vector<8xf32>
    %292 = vector.multi_reduction <add>, %291, %cst_172 [1] : vector<8x8xf32> to vector<8xf32>
    %293 = vector.shape_cast %292 : vector<8xf32> to vector<8x1xf32>
    %294 = tpu.reciprocal %293 {approx = true} : vector<8x1xf32> -> vector<8x1xf32>
    %295 = vector.broadcast %294 : vector<8x1xf32> to vector<8x8xf32>
    %296 = arith.mulf %291, %295 : vector<8x8xf32>
    %297 = arith.truncf %296 : vector<8x8xf32> to vector<8x8xbf16>
    %cst_173 = arith.constant dense<0.000000e+00> : vector<8x8xf32>
    %298 = tpu.matmul %297, %281, %cst_173 {dimension_numbers = #tpu.dot_dimension_numbers<[1], [0], [0], [1], [0, 0, 1, 1], [], []>} : vector<8x8xbf16>, vector<8x8xbf16>, vector<8x8xf32> -> vector<8x8xf32>
    %299 = arith.index_cast %272 : i32 to index
    %c0_174 = arith.constant 0 : index
    %300 = vector.load %arg18[%299, %c0_174] : memref<16x8xf32, #tpu.memory_space<vmem>>, vector<8x8xf32>
    tpu.vector_store %arg18[%299, %c0_174], %298 {strides = array<i32>} : memref<16x8xf32, #tpu.memory_space<vmem>>, vector<8x8xf32>,
    %c1_i32_175 = arith.constant 1 : i32
    %c8_i32_176 = arith.constant 8 : i32
    %301 = arith.muli %c1_i32_175, %c8_i32_176 : i32
    %302 = tpu.assume_multiple %301, 8 : i32
    %303 = arith.index_cast %302 : i32 to index
    %c0_177 = arith.constant 0 : index
    %304 = vector.load %arg15[%303, %c0_177] : memref<16x8xf32, #tpu.memory_space<vmem>>, vector<8x8xf32>
    %305 = arith.truncf %304 : vector<8x8xf32> to vector<8x8xbf16>
    %306 = arith.index_cast %302 : i32 to index
    %c0_178 = arith.constant 0 : index
    %307 = vector.load %arg16[%306, %c0_178] : memref<16x8xf32, #tpu.memory_space<vmem>>, vector<8x8xf32>
    %308 = arith.truncf %307 : vector<8x8xf32> to vector<8x8xbf16>
    %309 = arith.index_cast %302 : i32 to index
    %c0_179 = arith.constant 0 : index
    %310 = vector.load %arg17[%309, %c0_179] : memref<16x8xf32, #tpu.memory_space<vmem>>, vector<8x8xf32>
    %311 = arith.truncf %310 : vector<8x8xf32> to vector<8x8xbf16>
    %cst_180 = arith.constant dense<0.000000e+00> : vector<8x8xf32>
    %312 = tpu.matmul %305, %308, %cst_180 {dimension_numbers = #tpu.dot_dimension_numbers<[1], [1], [0], [0], [0, 0, 1, 0], [], []>} : vector<8x8xbf16>, vector<8x8xbf16>, vector<8x8xf32> -> vector<8x8xf32>
    %cst_181 = arith.constant 0.353553385 : f32
    %313 = vector.broadcast %cst_181 : f32 to vector<8x8xf32>
    %314 = arith.mulf %312, %313 : vector<8x8xf32>
    %cst_182 = arith.constant -1.000000e+09 : f32
    %315 = vector.broadcast %cst_182 : f32 to vector<8x8xf32>
    %316 = arith.select %31, %314, %315 : vector<8x8xi1>, vector<8x8xf32>
    %cst_183 = arith.constant dense<0xFF800000> : vector<8xf32>
    %317 = vector.multi_reduction <maximumf>, %316, %cst_183 [1] : vector<8x8xf32> to vector<8xf32>
    %318 = vector.shape_cast %317 : vector<8xf32> to vector<8x1xf32>
    %319 = vector.broadcast %318 : vector<8x1xf32> to vector<8x8xf32>
    %320 = arith.subf %316, %319 : vector<8x8xf32>
    %321 = math.exp %320 : vector<8x8xf32>
    %cst_184 = arith.constant dense<0.000000e+00> : vector<8xf32>
    %322 = vector.multi_reduction <add>, %321, %cst_184 [1] : vector<8x8xf32> to vector<8xf32>
    %323 = vector.shape_cast %322 : vector<8xf32> to vector<8x1xf32>
    %324 = tpu.reciprocal %323 {approx = true} : vector<8x1xf32> -> vector<8x1xf32>
    %325 = vector.broadcast %324 : vector<8x1xf32> to vector<8x8xf32>
    %326 = arith.mulf %321, %325 : vector<8x8xf32>
    %327 = arith.truncf %326 : vector<8x8xf32> to vector<8x8xbf16>
    %cst_185 = arith.constant dense<0.000000e+00> : vector<8x8xf32>
    %328 = tpu.matmul %327, %311, %cst_185 {dimension_numbers = #tpu.dot_dimension_numbers<[1], [0], [0], [1], [0, 0, 1, 1], [], []>} : vector<8x8xbf16>, vector<8x8xbf16>, vector<8x8xf32> -> vector<8x8xf32>
    %329 = arith.index_cast %302 : i32 to index
    %c0_186 = arith.constant 0 : index
    %330 = vector.load %arg18[%329, %c0_186] : memref<16x8xf32, #tpu.memory_space<vmem>>, vector<8x8xf32>
    tpu.vector_store %arg18[%329, %c0_186], %328 {strides = array<i32>} : memref<16x8xf32, #tpu.memory_space<vmem>>, vector<8x8xf32>,
    %c2_i32_187 = arith.constant 2 : i32
    %c0_188 = arith.constant 0 : index
    %c0_189 = arith.constant 0 : index
    %331 = vector.load %arg18[%c0_188, %c0_189] : memref<16x8xf32, #tpu.memory_space<vmem>>, vector<16x8xf32>
    %332 = arith.truncf %331 : vector<16x8xf32> to vector<16x8xbf16>
    %c0_190 = arith.constant 0 : index
    %333 = arith.index_cast %c2_i32_131 : i32 to index
    %c0_191 = arith.constant 0 : index
    %c0_192 = arith.constant 0 : index
    %334 = vector.load %arg8[%c0_190, %333, %c0_191, %c0_192] : memref<1x4x8x32xbf16, #tpu.memory_space<vmem>>, vector<1x1x8x32xbf16>
    %335 = vector.shape_cast %334 : vector<1x1x8x32xbf16> to vector<8x32xbf16>
    %cst_193 = arith.constant dense<0.000000e+00> : vector<16x32xf32>
    %336 = tpu.matmul %332, %335, %cst_193 {dimension_numbers = #tpu.dot_dimension_numbers<[1], [0], [0], [1], [0, 0, 1, 1], [], []>} : vector<16x8xbf16>, vector<8x32xbf16>, vector<16x32xf32> -> vector<16x32xf32>
    %337 = arith.addf %236, %336 : vector<16x32xf32>
    %c3_i32 = arith.constant 3 : i32
    %c0_194 = arith.constant 0 : index
    %338 = arith.index_cast %c3_i32 : i32 to index
    %c0_195 = arith.constant 0 : index
    %c0_196 = arith.constant 0 : index
    %339 = vector.load %arg6[%c0_194, %338, %c0_195, %c0_196] : memref<1x12x32x8xbf16, #tpu.memory_space<vmem>>, vector<1x1x32x8xbf16>
    %340 = vector.shape_cast %339 : vector<1x1x32x8xbf16> to vector<32x8xbf16>
    %cst_197 = arith.constant dense<0.000000e+00> : vector<16x8xf32>
    %341 = tpu.matmul %28, %340, %cst_197 {dimension_numbers = #tpu.dot_dimension_numbers<[1], [0], [0], [1], [0, 0, 1, 1], [], []>} : vector<16x32xbf16>, vector<32x8xbf16>, vector<16x8xf32> -> vector<16x8xf32>
    %c0_198 = arith.constant 0 : index
    %342 = arith.index_cast %c3_i32 : i32 to index
    %c0_199 = arith.constant 0 : index
    %c0_200 = arith.constant 0 : index
    %343 = vector.load %arg7[%c0_198, %342, %c0_199, %c0_200] : memref<1x12x1x8xf32, #tpu.memory_space<vmem>>, vector<1x1x1x8xf32>
    %344 = vector.shape_cast %343 : vector<1x1x1x8xf32> to vector<1x8xf32>
    %345 = vector.broadcast %344 : vector<1x8xf32> to vector<16x8xf32>
    %346 = arith.addf %341, %345 : vector<16x8xf32>
    %c0_201 = arith.constant 0 : index
    %c0_202 = arith.constant 0 : index
    %347 = vector.load %arg15[%c0_201, %c0_202] : memref<16x8xf32, #tpu.memory_space<vmem>>, vector<16x8xf32>
    tpu.vector_store %arg15[%c0_201, %c0_202], %346 {strides = array<i32>} : memref<16x8xf32, #tpu.memory_space<vmem>>, vector<16x8xf32>,
    %c4_i32_203 = arith.constant 4 : i32
    %348 = arith.addi %c4_i32_203, %c3_i32 : i32
    %c0_204 = arith.constant 0 : index
    %349 = arith.index_cast %348 : i32 to index
    %c0_205 = arith.constant 0 : index
    %c0_206 = arith.constant 0 : index
    %350 = vector.load %arg6[%c0_204, %349, %c0_205, %c0_206] : memref<1x12x32x8xbf16, #tpu.memory_space<vmem>>, vector<1x1x32x8xbf16>
    %351 = vector.shape_cast %350 : vector<1x1x32x8xbf16> to vector<32x8xbf16>
    %cst_207 = arith.constant dense<0.000000e+00> : vector<16x8xf32>
    %352 = tpu.matmul %28, %351, %cst_207 {dimension_numbers = #tpu.dot_dimension_numbers<[1], [0], [0], [1], [0, 0, 1, 1], [], []>} : vector<16x32xbf16>, vector<32x8xbf16>, vector<16x8xf32> -> vector<16x8xf32>
    %c4_i32_208 = arith.constant 4 : i32
    %353 = arith.addi %c4_i32_208, %c3_i32 : i32
    %c0_209 = arith.constant 0 : index
    %354 = arith.index_cast %353 : i32 to index
    %c0_210 = arith.constant 0 : index
    %c0_211 = arith.constant 0 : index
    %355 = vector.load %arg7[%c0_209, %354, %c0_210, %c0_211] : memref<1x12x1x8xf32, #tpu.memory_space<vmem>>, vector<1x1x1x8xf32>
    %356 = vector.shape_cast %355 : vector<1x1x1x8xf32> to vector<1x8xf32>
    %357 = vector.broadcast %356 : vector<1x8xf32> to vector<16x8xf32>
    %358 = arith.addf %352, %357 : vector<16x8xf32>
    %c0_212 = arith.constant 0 : index
    %c0_213 = arith.constant 0 : index
    %359 = vector.load %arg16[%c0_212, %c0_213] : memref<16x8xf32, #tpu.memory_space<vmem>>, vector<16x8xf32>
    tpu.vector_store %arg16[%c0_212, %c0_213], %358 {strides = array<i32>} : memref<16x8xf32, #tpu.memory_space<vmem>>, vector<16x8xf32>,
    %c8_i32_214 = arith.constant 8 : i32
    %360 = arith.addi %c8_i32_214, %c3_i32 : i32
    %c0_215 = arith.constant 0 : index
    %361 = arith.index_cast %360 : i32 to index
    %c0_216 = arith.constant 0 : index
    %c0_217 = arith.constant 0 : index
    %362 = vector.load %arg6[%c0_215, %361, %c0_216, %c0_217] : memref<1x12x32x8xbf16, #tpu.memory_space<vmem>>, vector<1x1x32x8xbf16>
    %363 = vector.shape_cast %362 : vector<1x1x32x8xbf16> to vector<32x8xbf16>
    %cst_218 = arith.constant dense<0.000000e+00> : vector<16x8xf32>
    %364 = tpu.matmul %28, %363, %cst_218 {dimension_numbers = #tpu.dot_dimension_numbers<[1], [0], [0], [1], [0, 0, 1, 1], [], []>} : vector<16x32xbf16>, vector<32x8xbf16>, vector<16x8xf32> -> vector<16x8xf32>
    %c8_i32_219 = arith.constant 8 : i32
    %365 = arith.addi %c8_i32_219, %c3_i32 : i32
    %c0_220 = arith.constant 0 : index
    %366 = arith.index_cast %365 : i32 to index
    %c0_221 = arith.constant 0 : index
    %c0_222 = arith.constant 0 : index
    %367 = vector.load %arg7[%c0_220, %366, %c0_221, %c0_222] : memref<1x12x1x8xf32, #tpu.memory_space<vmem>>, vector<1x1x1x8xf32>
    %368 = vector.shape_cast %367 : vector<1x1x1x8xf32> to vector<1x8xf32>
    %369 = vector.broadcast %368 : vector<1x8xf32> to vector<16x8xf32>
    %370 = arith.addf %364, %369 : vector<16x8xf32>
    %c0_223 = arith.constant 0 : index
    %c0_224 = arith.constant 0 : index
    %371 = vector.load %arg17[%c0_223, %c0_224] : memref<16x8xf32, #tpu.memory_space<vmem>>, vector<16x8xf32>
    tpu.vector_store %arg17[%c0_223, %c0_224], %370 {strides = array<i32>} : memref<16x8xf32, #tpu.memory_space<vmem>>, vector<16x8xf32>,
    %c0_i32_225 = arith.constant 0 : i32
    %c8_i32_226 = arith.constant 8 : i32
    %372 = arith.muli %c0_i32_225, %c8_i32_226 : i32
    %373 = tpu.assume_multiple %372, 8 : i32
    %374 = arith.index_cast %373 : i32 to index
    %c0_227 = arith.constant 0 : index
    %375 = vector.load %arg15[%374, %c0_227] : memref<16x8xf32, #tpu.memory_space<vmem>>, vector<8x8xf32>
    %376 = arith.truncf %375 : vector<8x8xf32> to vector<8x8xbf16>
    %377 = arith.index_cast %373 : i32 to index
    %c0_228 = arith.constant 0 : index
    %378 = vector.load %arg16[%377, %c0_228] : memref<16x8xf32, #tpu.memory_space<vmem>>, vector<8x8xf32>
    %379 = arith.truncf %378 : vector<8x8xf32> to vector<8x8xbf16>
    %380 = arith.index_cast %373 : i32 to index
    %c0_229 = arith.constant 0 : index
    %381 = vector.load %arg17[%380, %c0_229] : memref<16x8xf32, #tpu.memory_space<vmem>>, vector<8x8xf32>
    %382 = arith.truncf %381 : vector<8x8xf32> to vector<8x8xbf16>
    %cst_230 = arith.constant dense<0.000000e+00> : vector<8x8xf32>
    %383 = tpu.matmul %376, %379, %cst_230 {dimension_numbers = #tpu.dot_dimension_numbers<[1], [1], [0], [0], [0, 0, 1, 0], [], []>} : vector<8x8xbf16>, vector<8x8xbf16>, vector<8x8xf32> -> vector<8x8xf32>
    %cst_231 = arith.constant 0.353553385 : f32
    %384 = vector.broadcast %cst_231 : f32 to vector<8x8xf32>
    %385 = arith.mulf %383, %384 : vector<8x8xf32>
    %cst_232 = arith.constant -1.000000e+09 : f32
    %386 = vector.broadcast %cst_232 : f32 to vector<8x8xf32>
    %387 = arith.select %31, %385, %386 : vector<8x8xi1>, vector<8x8xf32>
    %cst_233 = arith.constant dense<0xFF800000> : vector<8xf32>
    %388 = vector.multi_reduction <maximumf>, %387, %cst_233 [1] : vector<8x8xf32> to vector<8xf32>
    %389 = vector.shape_cast %388 : vector<8xf32> to vector<8x1xf32>
    %390 = vector.broadcast %389 : vector<8x1xf32> to vector<8x8xf32>
    %391 = arith.subf %387, %390 : vector<8x8xf32>
    %392 = math.exp %391 : vector<8x8xf32>
    %cst_234 = arith.constant dense<0.000000e+00> : vector<8xf32>
    %393 = vector.multi_reduction <add>, %392, %cst_234 [1] : vector<8x8xf32> to vector<8xf32>
    %394 = vector.shape_cast %393 : vector<8xf32> to vector<8x1xf32>
    %395 = tpu.reciprocal %394 {approx = true} : vector<8x1xf32> -> vector<8x1xf32>
    %396 = vector.broadcast %395 : vector<8x1xf32> to vector<8x8xf32>
    %397 = arith.mulf %392, %396 : vector<8x8xf32>
    %398 = arith.truncf %397 : vector<8x8xf32> to vector<8x8xbf16>
    %cst_235 = arith.constant dense<0.000000e+00> : vector<8x8xf32>
    %399 = tpu.matmul %398, %382, %cst_235 {dimension_numbers = #tpu.dot_dimension_numbers<[1], [0], [0], [1], [0, 0, 1, 1], [], []>} : vector<8x8xbf16>, vector<8x8xbf16>, vector<8x8xf32> -> vector<8x8xf32>
    %400 = arith.index_cast %373 : i32 to index
    %c0_236 = arith.constant 0 : index
    %401 = vector.load %arg18[%400, %c0_236] : memref<16x8xf32, #tpu.memory_space<vmem>>, vector<8x8xf32>
    tpu.vector_store %arg18[%400, %c0_236], %399 {strides = array<i32>} : memref<16x8xf32, #tpu.memory_space<vmem>>, vector<8x8xf32>,
    %c1_i32_237 = arith.constant 1 : i32
    %c8_i32_238 = arith.constant 8 : i32
    %402 = arith.muli %c1_i32_237, %c8_i32_238 : i32
    %403 = tpu.assume_multiple %402, 8 : i32
    %404 = arith.index_cast %403 : i32 to index
    %c0_239 = arith.constant 0 : index
    %405 = vector.load %arg15[%404, %c0_239] : memref<16x8xf32, #tpu.memory_space<vmem>>, vector<8x8xf32>
    %406 = arith.truncf %405 : vector<8x8xf32> to vector<8x8xbf16>
    %407 = arith.index_cast %403 : i32 to index
    %c0_240 = arith.constant 0 : index
    %408 = vector.load %arg16[%407, %c0_240] : memref<16x8xf32, #tpu.memory_space<vmem>>, vector<8x8xf32>
    %409 = arith.truncf %408 : vector<8x8xf32> to vector<8x8xbf16>
    %410 = arith.index_cast %403 : i32 to index
    %c0_241 = arith.constant 0 : index
    %411 = vector.load %arg17[%410, %c0_241] : memref<16x8xf32, #tpu.memory_space<vmem>>, vector<8x8xf32>
    %412 = arith.truncf %411 : vector<8x8xf32> to vector<8x8xbf16>
    %cst_242 = arith.constant dense<0.000000e+00> : vector<8x8xf32>
    %413 = tpu.matmul %406, %409, %cst_242 {dimension_numbers = #tpu.dot_dimension_numbers<[1], [1], [0], [0], [0, 0, 1, 0], [], []>} : vector<8x8xbf16>, vector<8x8xbf16>, vector<8x8xf32> -> vector<8x8xf32>
    %cst_243 = arith.constant 0.353553385 : f32
    %414 = vector.broadcast %cst_243 : f32 to vector<8x8xf32>
    %415 = arith.mulf %413, %414 : vector<8x8xf32>
    %cst_244 = arith.constant -1.000000e+09 : f32
    %416 = vector.broadcast %cst_244 : f32 to vector<8x8xf32>
    %417 = arith.select %31, %415, %416 : vector<8x8xi1>, vector<8x8xf32>
    %cst_245 = arith.constant dense<0xFF800000> : vector<8xf32>
    %418 = vector.multi_reduction <maximumf>, %417, %cst_245 [1] : vector<8x8xf32> to vector<8xf32>
    %419 = vector.shape_cast %418 : vector<8xf32> to vector<8x1xf32>
    %420 = vector.broadcast %419 : vector<8x1xf32> to vector<8x8xf32>
    %421 = arith.subf %417, %420 : vector<8x8xf32>
    %422 = math.exp %421 : vector<8x8xf32>
    %cst_246 = arith.constant dense<0.000000e+00> : vector<8xf32>
    %423 = vector.multi_reduction <add>, %422, %cst_246 [1] : vector<8x8xf32> to vector<8xf32>
    %424 = vector.shape_cast %423 : vector<8xf32> to vector<8x1xf32>
    %425 = tpu.reciprocal %424 {approx = true} : vector<8x1xf32> -> vector<8x1xf32>
    %426 = vector.broadcast %425 : vector<8x1xf32> to vector<8x8xf32>
    %427 = arith.mulf %422, %426 : vector<8x8xf32>
    %428 = arith.truncf %427 : vector<8x8xf32> to vector<8x8xbf16>
    %cst_247 = arith.constant dense<0.000000e+00> : vector<8x8xf32>
    %429 = tpu.matmul %428, %412, %cst_247 {dimension_numbers = #tpu.dot_dimension_numbers<[1], [0], [0], [1], [0, 0, 1, 1], [], []>} : vector<8x8xbf16>, vector<8x8xbf16>, vector<8x8xf32> -> vector<8x8xf32>
    %430 = arith.index_cast %403 : i32 to index
    %c0_248 = arith.constant 0 : index
    %431 = vector.load %arg18[%430, %c0_248] : memref<16x8xf32, #tpu.memory_space<vmem>>, vector<8x8xf32>
    tpu.vector_store %arg18[%430, %c0_248], %429 {strides = array<i32>} : memref<16x8xf32, #tpu.memory_space<vmem>>, vector<8x8xf32>,
    %c2_i32_249 = arith.constant 2 : i32
    %c0_250 = arith.constant 0 : index
    %c0_251 = arith.constant 0 : index
    %432 = vector.load %arg18[%c0_250, %c0_251] : memref<16x8xf32, #tpu.memory_space<vmem>>, vector<16x8xf32>
    %433 = arith.truncf %432 : vector<16x8xf32> to vector<16x8xbf16>
    %c0_252 = arith.constant 0 : index
    %434 = arith.index_cast %c3_i32 : i32 to index
    %c0_253 = arith.constant 0 : index
    %c0_254 = arith.constant 0 : index
    %435 = vector.load %arg8[%c0_252, %434, %c0_253, %c0_254] : memref<1x4x8x32xbf16, #tpu.memory_space<vmem>>, vector<1x1x8x32xbf16>
    %436 = vector.shape_cast %435 : vector<1x1x8x32xbf16> to vector<8x32xbf16>
    %cst_255 = arith.constant dense<0.000000e+00> : vector<16x32xf32>
    %437 = tpu.matmul %433, %436, %cst_255 {dimension_numbers = #tpu.dot_dimension_numbers<[1], [0], [0], [1], [0, 0, 1, 1], [], []>} : vector<16x8xbf16>, vector<8x32xbf16>, vector<16x32xf32> -> vector<16x32xf32>
    %438 = arith.addf %337, %437 : vector<16x32xf32>
    %c4_i32_256 = arith.constant 4 : i32
    %439 = arith.addf %3, %438 : vector<16x32xf32>
    %440 = vector.extract_strided_slice %5 {offsets = [2, 0], sizes = [1, 32], strides = [1, 1]} : vector<6x32xf32> to vector<1x32xf32>
    %441 = vector.extract_strided_slice %5 {offsets = [3, 0], sizes = [1, 32], strides = [1, 1]} : vector<6x32xf32> to vector<1x32xf32>
    %cst_257 = arith.constant dense<0.000000e+00> : vector<16xf32>
    %442 = vector.multi_reduction <add>, %439, %cst_257 [1] : vector<16x32xf32> to vector<16xf32>
    %443 = vector.shape_cast %442 : vector<16xf32> to vector<16x1xf32>
    %cst_258 = arith.constant 3.200000e+01 : f32
    %444 = vector.broadcast %cst_258 : f32 to vector<16x1xf32>
    %445 = arith.divf %443, %444 : vector<16x1xf32>
    %446 = vector.broadcast %445 : vector<16x1xf32> to vector<16x32xf32>
    %447 = arith.subf %439, %446 : vector<16x32xf32>
    %448 = arith.mulf %447, %447 : vector<16x32xf32>
    %cst_259 = arith.constant dense<0.000000e+00> : vector<16xf32>
    %449 = vector.multi_reduction <add>, %448, %cst_259 [1] : vector<16x32xf32> to vector<16xf32>
    %450 = vector.shape_cast %449 : vector<16xf32> to vector<16x1xf32>
    %cst_260 = arith.constant 3.200000e+01 : f32
    %451 = vector.broadcast %cst_260 : f32 to vector<16x1xf32>
    %452 = arith.divf %450, %451 : vector<16x1xf32>
    %cst_261 = arith.constant 9.99999974E-6 : f32
    %453 = vector.broadcast %cst_261 : f32 to vector<16x1xf32>
    %454 = arith.addf %452, %453 : vector<16x1xf32>
    %455 = math.rsqrt %454 : vector<16x1xf32>
    %456 = vector.broadcast %455 : vector<16x1xf32> to vector<16x32xf32>
    %457 = arith.mulf %447, %456 : vector<16x32xf32>
    %458 = vector.broadcast %440 : vector<1x32xf32> to vector<16x32xf32>
    %459 = arith.mulf %457, %458 : vector<16x32xf32>
    %460 = vector.broadcast %441 : vector<1x32xf32> to vector<16x32xf32>
    %461 = arith.addf %459, %460 : vector<16x32xf32>
    %462 = arith.truncf %461 : vector<16x32xf32> to vector<16x32xbf16>
    %c0_262 = arith.constant 0 : index
    %c0_263 = arith.constant 0 : index
    %c0_264 = arith.constant 0 : index
    %463 = vector.load %arg11[%c0_262, %c0_263, %c0_264] : memref<1x32x128xbf16, #tpu.memory_space<vmem>>, vector<1x32x128xbf16>
    %464 = vector.shape_cast %463 : vector<1x32x128xbf16> to vector<32x128xbf16>
    %cst_265 = arith.constant dense<0.000000e+00> : vector<16x128xf32>
    %465 = tpu.matmul %462, %464, %cst_265 {dimension_numbers = #tpu.dot_dimension_numbers<[1], [0], [0], [1], [0, 0, 1, 1], [], []>} : vector<16x32xbf16>, vector<32x128xbf16>, vector<16x128xf32> -> vector<16x128xf32>
    %c0_266 = arith.constant 0 : index
    %c0_267 = arith.constant 0 : index
    %c0_268 = arith.constant 0 : index
    %466 = vector.load %arg10[%c0_266, %c0_267, %c0_268] : memref<1x1x128xf32, #tpu.memory_space<vmem>>, vector<1x1x128xf32>
    %467 = vector.shape_cast %466 : vector<1x1x128xf32> to vector<1x128xf32>
    %468 = vector.broadcast %467 : vector<1x128xf32> to vector<16x128xf32>
    %469 = arith.addf %465, %468 : vector<16x128xf32>
    %cst_269 = arith.constant 1.702000e+00 : f32
    %470 = vector.broadcast %cst_269 : f32 to vector<16x128xf32>
    %471 = arith.mulf %470, %469 : vector<16x128xf32>
    %472 = arith.negf %471 : vector<16x128xf32>
    %473 = math.exp %472 : vector<16x128xf32>
    %cst_270 = arith.constant 1.000000e+00 : f32
    %474 = vector.broadcast %cst_270 : f32 to vector<16x128xf32>
    %475 = arith.addf %474, %473 : vector<16x128xf32>
    %476 = arith.divf %474, %475 : vector<16x128xf32>
    %477 = arith.mulf %469, %476 : vector<16x128xf32>
    %478 = arith.truncf %477 : vector<16x128xf32> to vector<16x128xbf16>
    %c0_271 = arith.constant 0 : index
    %c0_272 = arith.constant 0 : index
    %c0_273 = arith.constant 0 : index
    %479 = vector.load %arg12[%c0_271, %c0_272, %c0_273] : memref<1x128x32xbf16, #tpu.memory_space<vmem>>, vector<1x128x32xbf16>
    %480 = vector.shape_cast %479 : vector<1x128x32xbf16> to vector<128x32xbf16>
    %cst_274 = arith.constant dense<0.000000e+00> : vector<16x32xf32>
    %481 = tpu.matmul %478, %480, %cst_274 {dimension_numbers = #tpu.dot_dimension_numbers<[1], [0], [0], [1], [0, 0, 1, 1], [], []>} : vector<16x128xbf16>, vector<128x32xbf16>, vector<16x32xf32> -> vector<16x32xf32>
    %482 = vector.extract_strided_slice %5 {offsets = [5, 0], sizes = [1, 32], strides = [1, 1]} : vector<6x32xf32> to vector<1x32xf32>
    %483 = vector.broadcast %482 : vector<1x32xf32> to vector<16x32xf32>
    %484 = arith.addf %481, %483 : vector<16x32xf32>
    %485 = arith.addf %439, %484 : vector<16x32xf32>
    %c0_275 = arith.constant 0 : index
    %c0_276 = arith.constant 0 : index
    %486 = vector.load %arg14[%c0_275, %c0_276] : memref<16x32xf32, #tpu.memory_space<vmem>>, vector<16x32xf32>
    tpu.vector_store %arg14[%c0_275, %c0_276], %485 {strides = array<i32>} : memref<16x32xf32, #tpu.memory_space<vmem>>, vector<16x32xf32>,
    %c1_i32_277 = arith.constant 1 : i32
    %487 = arith.cmpi eq, %arg0, %c1_i32_277 : i32
    %488 = arith.extui %487 : i1 to i32
    %c0_i32_278 = arith.constant 0 : i32
    %489 = arith.cmpi ne, %488, %c0_i32_278 : i32
    scf.if %489 {
      %c0_i32_279 = arith.constant 0 : i32
      %490 = arith.index_cast %c0_i32_279 : i32 to index
      %491 = memref.load %arg1[%490] : memref<2xi32, #tpu.memory_space<smem>>
      %492 = arith.index_cast %491 : i32 to index
      %c0_280 = arith.constant 0 : index
      %493 = vector.load %arg14[%492, %c0_280] : memref<16x32xf32, #tpu.memory_space<vmem>>, vector<1x32xf32>
      %494 = arith.index_cast %c0_i32_279 : i32 to index
      %c0_281 = arith.constant 0 : index
      %495 = vector.load %arg19[%494, %c0_281] : memref<2x32xf32, #tpu.memory_space<vmem>>, vector<1x32xf32>
      tpu.vector_store %arg19[%494, %c0_281], %493 {strides = array<i32>} : memref<2x32xf32, #tpu.memory_space<vmem>>, vector<1x32xf32>,
      %c1_i32_282 = arith.constant 1 : i32
      %496 = arith.index_cast %c1_i32_282 : i32 to index
      %497 = memref.load %arg1[%496] : memref<2xi32, #tpu.memory_space<smem>>
      %498 = arith.index_cast %497 : i32 to index
      %c0_283 = arith.constant 0 : index
      %499 = vector.load %arg14[%498, %c0_283] : memref<16x32xf32, #tpu.memory_space<vmem>>, vector<1x32xf32>
      %500 = arith.index_cast %c1_i32_282 : i32 to index
      %c0_284 = arith.constant 0 : index
      %501 = vector.load %arg19[%500, %c0_284] : memref<2x32xf32, #tpu.memory_space<vmem>>, vector<1x32xf32>
      tpu.vector_store %arg19[%500, %c0_284], %499 {strides = array<i32>} : memref<2x32xf32, #tpu.memory_space<vmem>>, vector<1x32xf32>,
      %c2_i32_285 = arith.constant 2 : i32
      %c0_286 = arith.constant 0 : index
      %c0_287 = arith.constant 0 : index
      %502 = vector.load %arg19[%c0_286, %c0_287] : memref<2x32xf32, #tpu.memory_space<vmem>>, vector<2x32xf32>
      %c0_288 = arith.constant 0 : index
      %c0_289 = arith.constant 0 : index
      %503 = vector.load %arg4[%c0_288, %c0_289] : memref<2x32xf32, #tpu.memory_space<vmem>>, vector<1x32xf32>
      %c1 = arith.constant 1 : index
      %c0_290 = arith.constant 0 : index
      %504 = vector.load %arg4[%c1, %c0_290] : memref<2x32xf32, #tpu.memory_space<vmem>>, vector<1x32xf32>
      %cst_291 = arith.constant dense<0.000000e+00> : vector<2xf32>
      %505 = vector.multi_reduction <add>, %502, %cst_291 [1] : vector<2x32xf32> to vector<2xf32>
      %506 = vector.shape_cast %505 : vector<2xf32> to vector<2x1xf32>
      %cst_292 = arith.constant 3.200000e+01 : f32
      %507 = vector.broadcast %cst_292 : f32 to vector<2x1xf32>
      %508 = arith.divf %506, %507 : vector<2x1xf32>
      %509 = vector.broadcast %508 : vector<2x1xf32> to vector<2x32xf32>
      %510 = arith.subf %502, %509 : vector<2x32xf32>
      %511 = arith.mulf %510, %510 : vector<2x32xf32>
      %cst_293 = arith.constant dense<0.000000e+00> : vector<2xf32>
      %512 = vector.multi_reduction <add>, %511, %cst_293 [1] : vector<2x32xf32> to vector<2xf32>
      %513 = vector.shape_cast %512 : vector<2xf32> to vector<2x1xf32>
      %cst_294 = arith.constant 3.200000e+01 : f32
      %514 = vector.broadcast %cst_294 : f32 to vector<2x1xf32>
      %515 = arith.divf %513, %514 : vector<2x1xf32>
      %cst_295 = arith.constant 9.99999974E-6 : f32
      %516 = vector.broadcast %cst_295 : f32 to vector<2x1xf32>
      %517 = arith.addf %515, %516 : vector<2x1xf32>
      %518 = math.rsqrt %517 : vector<2x1xf32>
      %519 = vector.broadcast %518 : vector<2x1xf32> to vector<2x32xf32>
      %520 = arith.mulf %510, %519 : vector<2x32xf32>
      %521 = vector.broadcast %503 : vector<1x32xf32> to vector<2x32xf32>
      %522 = arith.mulf %520, %521 : vector<2x32xf32>
      %523 = vector.broadcast %504 : vector<1x32xf32> to vector<2x32xf32>
      %524 = arith.addf %522, %523 : vector<2x32xf32>
      %525 = arith.truncf %524 : vector<2x32xf32> to vector<2x32xbf16>
      %c0_296 = arith.constant 0 : index
      %c0_297 = arith.constant 0 : index
      %526 = vector.load %arg5[%c0_296, %c0_297] : memref<32x16xbf16, #tpu.memory_space<vmem>>, vector<32x16xbf16>
      %cst_298 = arith.constant dense<0.000000e+00> : vector<2x16xf32>
      %527 = tpu.matmul %525, %526, %cst_298 {dimension_numbers = #tpu.dot_dimension_numbers<[1], [0], [0], [1], [0, 0, 1, 1], [], []>} : vector<2x32xbf16>, vector<32x16xbf16>, vector<2x16xf32> -> vector<2x16xf32>
      %c0_299 = arith.constant 0 : index
      %c0_300 = arith.constant 0 : index
      %528 = vector.load %arg13[%c0_299, %c0_300] : memref<2x16xf32, #tpu.memory_space<vmem>>, vector<2x16xf32>
      tpu.vector_store %arg13[%c0_299, %c0_300], %527 {strides = array<i32>} : memref<2x16xf32, #tpu.memory_space<vmem>>, vector<2x16xf32>,
    } else {
    }
    return
  }
  func.func @transform_0(%arg0: i32, %arg1: memref<2xi32, #tpu.memory_space<smem>>) -> (i32, i32) {
    %c0_i32 = arith.constant 0 : i32
    %c0_i32_0 = arith.constant 0 : i32
    %c0_i32_1 = arith.constant 0 : i32
    return %c0_i32, %c0_i32_0 : i32, i32
  }
  func.func @transform_1(%arg0: i32, %arg1: memref<2xi32, #tpu.memory_space<smem>>) -> (i32, i32) {
    %c0_i32 = arith.constant 0 : i32
    %c0_i32_0 = arith.constant 0 : i32
    %c0_i32_1 = arith.constant 0 : i32
    return %c0_i32, %c0_i32_0 : i32, i32
  }
  func.func @transform_2(%arg0: i32, %arg1: memref<2xi32, #tpu.memory_space<smem>>) -> (i32, i32) {
    %c0_i32 = arith.constant 0 : i32
    %c0_i32_0 = arith.constant 0 : i32
    %c0_i32_1 = arith.constant 0 : i32
    return %c0_i32, %c0_i32_0 : i32, i32
  }
  func.func @transform_3(%arg0: i32, %arg1: memref<2xi32, #tpu.memory_space<smem>>) -> (i32, i32) {
    %c0_i32 = arith.constant 0 : i32
    %c0_i32_0 = arith.constant 0 : i32
    %c0_i32_1 = arith.constant 0 : i32
    return %c0_i32, %c0_i32_0 : i32, i32
  }
  func.func @transform_4(%arg0: i32, %arg1: memref<2xi32, #tpu.memory_space<smem>>) -> (i32, i32, i32, i32) {
    %c0_i32 = arith.constant 0 : i32
    %c0_i32_0 = arith.constant 0 : i32
    %c0_i32_1 = arith.constant 0 : i32
    %c0_i32_2 = arith.constant 0 : i32
    return %arg0, %c0_i32, %c0_i32_0, %c0_i32_1 : i32, i32, i32, i32
  }
  func.func @transform_5(%arg0: i32, %arg1: memref<2xi32, #tpu.memory_space<smem>>) -> (i32, i32, i32, i32) {
    %c0_i32 = arith.constant 0 : i32
    %c0_i32_0 = arith.constant 0 : i32
    %c0_i32_1 = arith.constant 0 : i32
    %c0_i32_2 = arith.constant 0 : i32
    return %arg0, %c0_i32, %c0_i32_0, %c0_i32_1 : i32, i32, i32, i32
  }
  func.func @transform_6(%arg0: i32, %arg1: memref<2xi32, #tpu.memory_space<smem>>) -> (i32, i32, i32, i32) {
    %c0_i32 = arith.constant 0 : i32
    %c0_i32_0 = arith.constant 0 : i32
    %c0_i32_1 = arith.constant 0 : i32
    %c0_i32_2 = arith.constant 0 : i32
    return %arg0, %c0_i32, %c0_i32_0, %c0_i32_1 : i32, i32, i32, i32
  }
  func.func @transform_7(%arg0: i32, %arg1: memref<2xi32, #tpu.memory_space<smem>>) -> (i32, i32, i32) {
    %c0_i32 = arith.constant 0 : i32
    %c0_i32_0 = arith.constant 0 : i32
    %c0_i32_1 = arith.constant 0 : i32
    return %arg0, %c0_i32, %c0_i32_0 : i32, i32, i32
  }
  func.func @transform_8(%arg0: i32, %arg1: memref<2xi32, #tpu.memory_space<smem>>) -> (i32, i32, i32) {
    %c0_i32 = arith.constant 0 : i32
    %c0_i32_0 = arith.constant 0 : i32
    %c0_i32_1 = arith.constant 0 : i32
    return %arg0, %c0_i32, %c0_i32_0 : i32, i32, i32
  }
  func.func @transform_9(%arg0: i32, %arg1: memref<2xi32, #tpu.memory_space<smem>>) -> (i32, i32, i32) {
    %c0_i32 = arith.constant 0 : i32
    %c0_i32_0 = arith.constant 0 : i32
    %c0_i32_1 = arith.constant 0 : i32
    return %arg0, %c0_i32, %c0_i32_0 : i32, i32, i32
  }
  func.func @transform_10(%arg0: i32, %arg1: memref<2xi32, #tpu.memory_space<smem>>) -> (i32, i32, i32) {
    %c0_i32 = arith.constant 0 : i32
    %c0_i32_0 = arith.constant 0 : i32
    %c0_i32_1 = arith.constant 0 : i32
    return %arg0, %c0_i32, %c0_i32_0 : i32, i32, i32
  }
  func.func @transform_11(%arg0: i32, %arg1: memref<2xi32, #tpu.memory_space<smem>>) -> (i32, i32) {
    %c0_i32 = arith.constant 0 : i32
    %c0_i32_0 = arith.constant 0 : i32
    %c0_i32_1 = arith.constant 0 : i32
    return %c0_i32, %c0_i32_0 : i32, i32
  }
}

</mosaic_0001>

<bundles_post_ra>
// kernel: text_encoder_forward.1
= control target key start
LH: loop header
LB: loop body
LE: loop exit
PB: predicated region body
PF: predicated region fallthrough
CT: control target
= control target key end

     0   :  { %s4180_s0 = inlined_call_operand.vmem [shape: s32[2], index: 0, kind: input, shape index: {}]   ;;  %s4181_s1 = inlined_call_operand.vmem [shape: f32[16,32], index: 1, kind: input, shape index: {}]   ;;  %s4182_s2 = inlined_call_operand.vmem [shape: f32[8,32], index: 2, kind: input, shape index: {}]   ;;  %s4183_s3 = inlined_call_operand.vmem [shape: f32[2,32], index: 3, kind: input, shape index: {}]   ;;  %s4184_s4 = inlined_call_operand.vmem [shape: bf16[32,16], index: 4, kind: input, shape index: {}]   ;;  %s4185_s5 = inlined_call_operand.vmem [shape: bf16[2,12,32,8], index: 5, kind: input, shape index: {}]   ;;  %s4186_s6 = inlined_call_operand.vmem [shape: f32[2,12,1,8], index: 6, kind: input, shape index: {}]   ;;  %s4187_s7 = inlined_call_operand.vmem [shape: bf16[2,4,8,32], index: 7, kind: input, shape index: {}]   ;;  %s4188_s8 = inlined_call_operand.vmem [shape: f32[2,6,32], index: 8, kind: input, shape index: {}]   ;;  %s4189_s9 = inlined_call_operand.vmem [shape: f32[2,1,128], index: 9, kind: input, shape index: {}]   ;;  %s4190_s10 = inlined_call_operand.vmem [shape: bf16[2,32,128], index: 10, kind: input, shape index: {}]   ;;  %s4191_s11 = inlined_call_operand.vmem [shape: bf16[2,128,32], index: 11, kind: input, shape index: {}]   ;;  %s4192_s12 = inlined_call_operand.hbm [shape: f32[2,16], index: 12, kind: output, shape index: {}]  }
   0x1   :  { %4195 = sst [smem:[#allocation15_spill]] %s4185_s5  ;;  %s17_s23 = sshll.u32 %s4180_s0, 4  ;;  %s18_s23 = int_to_ptr.vmem [resolvable:$true] %s17_s23 }
   0x2   :  { %4196 = sst [smem:[#allocation16_spill]] %s4187_s7  ;;  %s3578_s24 = scalar_lea.vmem %s18_s23, 16 }
   0x3   :  { %4197 = sst [smem:[#allocation17_spill]] %s4192_s12  ;;  %p3579_p0 = scmp.ne.s32.totalorder %s18_s23, %s3578_s24 }
   0x4   :  { %p3583_p1 = scmp.lt.s32.totalorder %s18_s23, %s18_s23  ;;  %p3584_p2 = scmp.lt.s32.totalorder %s3578_s24, %s3578_s24 }
   0x6   :  { %p3585_p3 = por %p3584_p2, %p3583_p1 }
   0x8   :  { %p3586_p4 = pnand %p3585_p3, %p3579_p0 }
   0xa   :  { %3589 = shalt.err (!%p3586_p4)  }
   0xb   :  { %s3630_s25 = smov [#allocation9]  }
   0xc   :  { %20 = dma.vmem_to_smem %s18_s23, 16, %s3630_s25, [#allocation8] }
   0xd   :  { %3620 = dma.done.wait [#allocation8], 16 }
   0xe   :  { %3621 = vsyncadd [#allocation8], 4294967280 }
   0xf   :  { %22 = sfence }
  0x10   :  { %23 = vsyncpa [#allocation11], 0  ;;  %s3704_s26 = smov 0  }
  0x11 LB: > { %4198 = sst [smem:[#allocation14_spill]] %s3628_s26  ;;  %s3710_s0 = sadd.s32 4294967295, %s3628_s26   ;;  %s3628_s26 = sphi %s3704_s26, %s29_s26  }
  0x12   : > { %p2959_p5 = scmp.ge.s32.totalorder %s3628_s26, 1  ;;  %p396_p6 = scmp.lt.s32.totalorder %s3628_s26, 3 }
  0x14   : > { %p397_p7 = pnand %p2959_p5, %p396_p6 }
  0x15   : > { %p457_p8 = scmp.lt.s32.totalorder (!%p397_p7), %s3710_s0, 1  ;;  %s4199_s7 = sld [smem:[#allocation16_spill]] (!%p397_p7) }
  0x16   : > { %400 = sbr.rel (%p397_p7) target bundleno = 5944 (0x1738), region = 64  ;;  %s4200_s5 = sld [smem:[#allocation15_spill]] (!%p397_p7) }
  0x17   : > { %p2968_p9 = scmp.ne.s32.totalorder (!%p397_p7), %s3710_s0, 0 }
  0x1d   : > { %s3716_s27 = scalar_select %p457_p8, %s3710_s0, 1 }
  0x1e   : > { %v493_v0 = vld [vmem:[%s4181_s1] sm:$0xff] (!%p2968_p9)  ;;  %vm496_vm0 = vcmask (!%p2968_p9), 261120   ;;  %v2969_v2 = vld [vmem:[%s4181_s1 + $0x8] sm:$0xff] (!%p2968_p9) }
  0x1f   : > { %s3467_s28 = smul.u32 192, %s3716_s27  ;;  %s3121_s29 = sshll.u32 %s3716_s27, 4  ;;  %v494_v1 = vld [vmem:[%s4182_s2] sm:$0xff] (!%p2968_p9) }
  0x20   : > { %s3468_s30 = smul.u32 12, %s3716_s27  ;;  %s3724_s15 = scalar_lea.vmem %s4199_s7, %s3121_s29  ;;  %v495_v3 = vadd.f32 (!%p2968_p9), %v494_v1, %v493_v0  ;;  %v501_v4 = vadd.f32 (!%p2968_p9), %v2969_v2, %v494_v1 }
  0x21   : > { %s3729_s18 = scalar_lea.vmem %s4200_s5, %s3467_s28  ;;  %s2963_s19 = sshll.u32 %s3716_s27, 3 }
  0x22   : > { %s3735_s22 = scalar_lea.vmem %s4186_s6, %s3468_s30  ;;  %s3740_s25 = scalar_lea.vmem %s4188_s8, %s2963_s19  ;;  %497 = vst.msk [vmem:[#allocation2] sm:$0xff] (!%p2968_p9), %vm496_vm0, %v495_v3  ;;  %503 = vst.msk [vmem:[#allocation2 + $0x8] sm:$0xff] (!%p2968_p9), %vm496_vm0, %v501_v4 }
  0x23   : > { %s477_s14 = scalar_lea.vmem %s4189_s9, %s3716_s27  ;;  %s3749_s28 = scalar_lea.vmem %s4190_s10, %s3121_s29 }
  0x24   : > { %s3123_s16 = sshll.u32 %s3716_s27, 6  ;;  %492 = sbr.rel (%p2968_p9) target bundleno = 43 (0x2b), region = 68 }
  0x25   : > { %s3755_s30 = scalar_lea.vmem %s4191_s11, %s3123_s16 }
  0x2b PF: > { %v504_v5 = vld [vmem:[#allocation2] sm:$0xff]  ;;  %vm507_vm1 = vcmask 261120   ;;  %v505_v6 = vld [vmem:[#allocation2 + $0x8] sm:$0xff]  ;;  %v3631_v20 = vmov 0.0   ;;  %vm3632_vm2 = vmmov 0   ;;  %v535_v25 = vlaneseq  ;;  %p3110_p10 = scmp.ne.s32.totalorder %s3710_s0, 1 }
  0x2c   : > { %v508_v7 = vsel %vm507_vm1, %v504_v5, 0.0  ;;  %v511_v8 = vsel %vm507_vm1, %v505_v6, 0.0  ;;  %v3489_v19 = vld [vmem:[%s3729_s18] sm:$0xff]   ;;  %3215 = vmatprep.subr.bf16.mxu0 %v3631_v20  ;;  %3239 = vmatprep.subr.bf16.mxu1 %v3631_v20  ;;  %v3490_v21 = vld [vmem:[%s3729_s18 + $0x8] sm:$0xff]   ;;  %vm624_vm3 = vcmask 64512   ;;  %vm832_vm4 = vcmask 1043456  }
  0x2d   : > { %509 = vadd.xlane.f32.xlu0 %v508_v7  ;;  %3216 = vmatpush3.bf16.msra.mxu0 %v3489_v19  ;;  %v3782_v29 = vshrl.u32 %v535_v25, 7  ;;  %v3786_v31 = vld [vmem:[%s3740_s25] sm:$0x3f]  ;;  %v3492_v45 = vld [vmem:[%s3729_s18 + $0x48] sm:$0xff]   ;;  %s2741_s27 = sld [smem:[#allocation9]] (!%p3110_p10)  ;;  %vm2744_vm6 = vcmask (!%p3110_p10), 253952  }
  0x2e   : > { %3217 = vmatprep.subr.bf16.mxu0 %v3631_v20  ;;  %3219 = vmatprep.mubr.msk.bf16.mxu0 %vm3632_vm2, %v3631_v20  ;;  %v3491_v43 = vld [vmem:[%s3729_s18 + $0x40] sm:$0xff]   ;;  %v3494_v47 = vld [vmem:[%s3729_s18 + $0x88] sm:$0xff]   ;;  %vm2753_vm7 = vcmask (!%p3110_p10), 254976   ;;  %vm3634_vm8 = vmmov (!%p3110_p10), 0   ;;  %vm2837_vm9 = vcmask (!%p3110_p10), 123904  }
  0x2f   : > { %3241 = vmatprep.mubr.msk.bf16.mxu1 %vm3632_vm2, %v3631_v20  ;;  %v537_v30 = vsub.s32 0, %v3782_v29  ;;  %v543_v34 = vsub.s32 1, %v3782_v29  ;;  %v3493_v46 = vld [vmem:[%s3729_s18 + $0x80] sm:$0xff]   ;;  %v2988_v62 = vld [vmem:[%s3735_s22 + $0x8] ss:$0 sm:$0xff] }
  0x30   : > { %v2970_v48 = vld [vmem:[%s3735_s22] ss:$0 sm:$0xff]  ;;  %v2979_v55 = vld [vmem:[%s3735_s22 + $0x4] ss:$0 sm:$0xff] }
  0x31   : > { %512 = vadd.xlane.f32.xlu0 %v511_v8  ;;  %3218 = vmatpush3.bf16.msra.mxu0 %v3490_v21  ;;  %v538_v33 = vrot.slane %v3786_v31, %v537_v30  ;;  %v544_v37 = vrot.slane %v3786_v31, %v543_v34 }
  0x32   : > { %3223 = vmatprep.subr.bf16.mxu0 %v3631_v20 }
  0xba   : > { %v510_v9 = vpop.xlane.xlu0 %509 }
  0xbb   : > { %v515_v10 = vmul.f32 0.03125, %v510_v9 }
  0xbd   : > { %v517_v11 = vsub.f32 %v504_v5, %v515_v10 }
  0xbe   : > { %v513_v12 = vpop.xlane.xlu0 %512 }
  0xbf   : > { %v516_v13 = vmul.f32 0.03125, %v513_v12  ;;  %v519_v14 = vmul.f32 %v517_v11, %v517_v11 }
  0xc1   : > { %v518_v15 = vsub.f32 %v505_v6, %v516_v13  ;;  %v521_v16 = vsel %vm507_vm1, %v519_v14, 0.0 }
  0xc2   : > { %522 = vadd.xlane.f32.xlu1 %v521_v16 }
  0xc3   : > { %v520_v17 = vmul.f32 %v518_v15, %v518_v15 }
  0xc5   : > { %v524_v18 = vsel %vm507_vm1, %v520_v17, 0.0 }
  0xc6   : > { %525 = vadd.xlane.f32.xlu1 %v524_v18  ;;  %v551_v18 = vand.u32 127, %v535_v25 }
  0xc8   : > { %vm3836_vm5 = vcmp.le.s32.totalorder %v551_v18, %v3782_v29 }
 0x14f   : > { %v523_v22 = vpop.xlane.xlu1 %522 }
 0x150   : > { %v527_v23 = vmul.f32 0.03125, %v523_v22 }
 0x152   : > { %v529_v24 = vadd.f32 1e-05, %v527_v23 }
 0x153   : > { %v526_v26 = vpop.xlane.xlu1 %525 }
 0x154   : > { %3523 = vrsqrt.f32 %v529_v24  ;;  %v528_v27 = vmul.f32 0.03125, %v526_v26 }
 0x156   : > { %v530_v28 = vadd.f32 1e-05, %v528_v27 }
 0x158   : > { %3525 = vrsqrt.f32 %v530_v28 }
 0x15e   : > { %v3524_v32 = vpop.eup %3523 }
 0x15f   : > { %v533_v35 = vmul.f32 %v3524_v32, %v517_v11 }
 0x161   : > { %v539_v38 = vmul.f32 %v538_v33, %v533_v35 }
 0x162   : > { %v3526_v36 = vpop.eup %3525 }
 0x163   : > { %v534_v39 = vmul.f32 %v3526_v36, %v518_v15  ;;  %v545_v41 = vadd.f32 %v544_v37, %v539_v38 }
 0x165   : > { %v540_v40 = vmul.f32 %v538_v33, %v534_v39 }
 0x167   : > { %v546_v42 = vadd.f32 %v544_v37, %v540_v40 }
 0x169   : > { %v3792_v44 = vpack.c.bf16 %v546_v42, %v545_v41 }
 0x16b   : > { %3220 = vmatmul.mubr.msk.bf16.vlgmr.msra.gmra.mrb[0].mxu0 %vm507_vm1, %v3792_v44 }
 0x16c   : > { %3224 = vmatpush3.bf16.msra.mxu0 %v3491_v43  ;;  %3227 = vmatprep.mubr.msk.bf16.mxu0 %vm3632_vm2, %v3631_v20 }
 0x16d   : > { %3225 = vmatprep.subr.bf16.mxu0 %v3631_v20 }
 0x170   : > { %3226 = vmatpush3.bf16.msra.mxu0 %v3492_v45 }
 0x171   : > { %3231 = vmatprep.subr.bf16.mxu0 %v3631_v20 }
 0x173   : > { %3228 = vmatmul.mubr.msk.bf16.vlgmr.msra.gmra.mrb[4].mxu0 %vm507_vm1, %v3792_v44 }
 0x174   : > { %3232 = vmatpush3.bf16.msra.mxu0 %v3493_v46  ;;  %3235 = vmatprep.mubr.msk.bf16.mxu0 %vm3632_vm2, %v3631_v20 }
 0x175   : > { %3233 = vmatprep.subr.bf16.mxu0 %v3631_v20 }
 0x178   : > { %3234 = vmatpush3.bf16.msra.mxu0 %v3494_v47 }
 0x179   : > { %3245 = vmatprep.subr.bf16.mxu0 %v3631_v20 }
 0x17b   : > { %3236 = vmatmul.mubr.msk.bf16.vlgmr.msra.gmra.mrb[8].mxu0 %vm507_vm1, %v3792_v44 }
 0x17c   : > { %3247 = vmatprep.mubr.msk.bf16.mxu0 %vm3632_vm2, %v3631_v20 }
 0x23e   : > { %v617_v49 = vpop.f32.mrb[0].mxu0 }
 0x23f   : > { %v618_v50 = vadd.f32 %v2970_v48, %v617_v49  ;;  %v3221_v51 = vpop.f32.mrb[1].mxu0 }
 0x240   : > { %v620_v52 = vpop.f32.mrb[2].mxu0 }
 0x241   : > { %625 = vst.msk [vmem:[#allocation3] sm:$0xff] %vm624_vm3, %v618_v50  ;;  %v621_v53 = vadd.f32 %v2970_v48, %v620_v52  ;;  %v3222_v54 = vpop.f32.mrb[3].mxu0 }
 0x243   : > { %626 = vst.msk [vmem:[#allocation3 + $0x8] sm:$0xff] %vm624_vm3, %v621_v53 }
 0x246   : > { %v686_v56 = vpop.f32.mrb[4].mxu0 }
 0x247   : > { %v687_v57 = vadd.f32 %v2979_v55, %v686_v56  ;;  %v3229_v58 = vpop.f32.mrb[5].mxu0 }
 0x248   : > { %v689_v59 = vpop.f32.mrb[6].mxu0  ;;  %v763_v9 = vld [vmem:[#allocation3] sm:$0xff] }
 0x249   : > { %693 = vst.msk [vmem:[#allocation4] sm:$0xff] %vm624_vm3, %v687_v57  ;;  %v690_v60 = vadd.f32 %v2979_v55, %v689_v59  ;;  %v3230_v61 = vpop.f32.mrb[7].mxu0  ;;  %v764_v12 = vpack.c.bf16 %v763_v9, %v763_v9  ;;  %v3495_v58 = vld [vmem:[%s3729_s18 + $0x10] sm:$0xff]   ;;  %v3002_v9 = vld [vmem:[%s3735_s22 + $0x1] ss:$0 sm:$0xff] }
 0x24a   : > { %v878_v16 = vld [vmem:[#allocation3 + $0x8] sm:$0xff]  ;;  %v3497_v61 = vld [vmem:[%s3729_s18 + $0x90] sm:$0xff]  }
 0x24b   : > { %694 = vst.msk [vmem:[#allocation4 + $0x8] sm:$0xff] %vm624_vm3, %v690_v60  ;;  %v879_v17 = vpack.c.bf16 %v878_v16, %v878_v16  ;;  %v3496_v60 = vld [vmem:[%s3729_s18 + $0x18] sm:$0xff]  }
 0x24e   : > { %v754_v63 = vpop.f32.mrb[8].mxu0 }
 0x24f   : > { %v755_v0 = vadd.f32 %v2988_v62, %v754_v63  ;;  %v3237_v1 = vpop.f32.mrb[9].mxu0  ;;  %v997_v63 = vld [vmem:[%s3724_s15] sm:$0xf] }
 0x250   : > { %v757_v2 = vpop.f32.mrb[10].mxu0  ;;  %v765_v3 = vld [vmem:[#allocation4] sm:$0xff] }
 0x251   : > { %761 = vst.msk [vmem:[#allocation5] sm:$0xff] %vm624_vm3, %v755_v0  ;;  %v758_v4 = vadd.f32 %v2988_v62, %v757_v2  ;;  %v3238_v5 = vpop.f32.mrb[11].mxu0  ;;  %v766_v6 = vpack.c.bf16 %v765_v3, %v765_v3  ;;  %v3498_v62 = vld [vmem:[%s3729_s18 + $0x98] sm:$0xff]   ;;  %v1002_v0 = vsel %vm832_vm4, %v997_v63, 0 }
 0x252   : > { %v881_v8 = vld [vmem:[#allocation4 + $0x8] sm:$0xff] }
 0x253   : > { %762 = vst.msk [vmem:[#allocation5 + $0x8] sm:$0xff] %vm624_vm3, %v758_v4  ;;  %v773_v7 = vsel %vm624_vm3, %v766_v6, 0  ;;  %v882_v10 = vpack.c.bf16 %v881_v8, %v881_v8 }
 0x254   : > { %3240 = vmatpush3.bf16.xpose.msra.mxu1 %v773_v7 }
 0x255   : > { %3251 = vmatprep.subr.bf16.mxu1 %v3631_v20  ;;  %v890_v15 = vsel %vm624_vm3, %v882_v10, 0 }
 0x258   : > { %v767_v11 = vld [vmem:[#allocation5] sm:$0xff] }
 0x259   : > { %v768_v13 = vpack.c.bf16 %v767_v11, %v767_v11 }
 0x25a   : > { %v884_v50 = vld [vmem:[#allocation5 + $0x8] sm:$0xff] }
 0x25b   : > { %3242 = vmatmul.mubr.msk.bf16.vlgmr.msra.gmra.mrb[0].mxu1 %vm624_vm3, %v764_v12  ;;  %v834_v14 = vsel %vm832_vm4, %v768_v13, 0  ;;  %v885_v53 = vpack.c.bf16 %v884_v50, %v884_v50  ;;  %v3499_v13 = vld [vmem:[%s3729_s18 + $0x50] sm:$0xff]  }
 0x25c   : > { %3246 = vmatpush3.bf16.msra.mxu0 %v834_v14  ;;  %3252 = vmatpush3.bf16.xpose.msra.mxu1 %v890_v15 }
 0x25d   : > { %3253 = vmatprep.mubr.msk.bf16.mxu1 %vm3632_vm2, %v3631_v20  ;;  %3257 = vmatprep.subr.bf16.mxu0 %v3631_v20  ;;  %v950_v55 = vsel %vm832_vm4, %v885_v53, 0 }
 0x25e   : > { %3263 = vmatprep.subr.bf16.mxu1 %v3631_v20 }
 0x263   : > { %3254 = vmatmul.mubr.msk.bf16.vlgmr.msra.gmra.mrb[4].mxu1 %vm624_vm3, %v879_v17 }
 0x264   : > { %3265 = vmatprep.mubr.msk.bf16.mxu1 %vm3632_vm2, %v3631_v20  ;;  %3264 = vmatpush3.bf16.msra.mxu1 %v1002_v0 }
 0x265   : > { %3277 = vmatprep.subr.bf16.mxu1 %v3631_v20 }
 0x32e   : > { %v809_v19 = vpop.f32.mrb[0].mxu1 }
 0x32f   : > { %v815_v22 = vmul.f32 0.35355338, %v809_v19  ;;  %v3243_v23 = vpop.f32.mrb[1].mxu1 }
 0x330   : > { %v812_v24 = vpop.f32.mrb[2].mxu1  ;;  %v3020_v23 = vld [vmem:[%s3735_s22 + $0x9] ss:$0 sm:$0xff] }
 0x331   : > { %v3244_v26 = vpop.f32.mrb[3].mxu1  ;;  %v816_v27 = vsel %vm3836_vm5, %v815_v22, -1e+09  ;;  %v3500_v22 = vld [vmem:[%s3729_s18 + $0x58] sm:$0xff]  }
 0x332   : > { %v817_v28 = vsel %vm624_vm3, %v816_v27, -inf }
 0x333   : > { %818 = vmax.xlane.f32.xlu0 %v817_v28 }
 0x336   : > { %v926_v30 = vpop.f32.mrb[4].mxu1 }
 0x337   : > { %v932_v32 = vmul.f32 0.35355338, %v926_v30  ;;  %v3255_v33 = vpop.f32.mrb[5].mxu1 }
 0x338   : > { %v929_v25 = vpop.f32.mrb[6].mxu1 }
 0x339   : > { %v3256_v34 = vpop.f32.mrb[7].mxu1  ;;  %v933_v35 = vsel %vm3836_vm5, %v932_v32, -1e+09 }
 0x33a   : > { %v934_v36 = vsel %vm624_vm3, %v933_v35, -inf }
 0x33b   : > { %935 = vmax.xlane.f32.xlu1 %v934_v36 }
 0x3c0   : > { %v819_v37 = vpop.xlane.xlu0 %818 }
 0x3c1   : > { %v820_v38 = vsub.f32 %v816_v27, %v819_v37 }
 0x3c3   : > { %v821_v39 = vmul.f32 1.442695, %v820_v38 }
 0x3c5   : > { %3527 = vpow2.f32 %v821_v39  ;;  %v3011_v39 = vld [vmem:[%s3735_s22 + $0x5] ss:$0 sm:$0xff] }
 0x3c8   : > { %v936_v40 = vpop.xlane.xlu1 %935 }
 0x3c9   : > { %v937_v41 = vsub.f32 %v933_v35, %v936_v40 }
 0x3cb   : > { %v938_v42 = vmul.f32 1.442695, %v937_v41 }
 0x3cd   : > { %3529 = vpow2.f32 %v938_v42 }
 0x3cf   : > { %v3528_v43 = vpop.eup %3527 }
 0x3d0   : > { %v823_v45 = vsel %vm624_vm3, %v3528_v43, 0.0 }
 0x3d1   : > { %824 = vadd.xlane.f32.xlu0 %v823_v45 }
 0x3d7   : > { %v3530_v46 = vpop.eup %3529 }
 0x3d8   : > { %v940_v47 = vsel %vm624_vm3, %v3530_v46, 0.0 }
 0x3d9   : > { %941 = vadd.xlane.f32.xlu1 %v940_v47 }
 0x45e   : > { %v825_v48 = vpop.xlane.xlu0 %824 }
 0x45f   : > { %3531 = vrcp.f32 %v825_v48 }
 0x466   : > { %v942_v49 = vpop.xlane.xlu1 %941 }
 0x467   : > { %3533 = vrcp.f32 %v942_v49 }
 0x469   : > { %v3532_v51 = vpop.eup %3531 }
 0x46a   : > { %v827_v52 = vmul.f32 %v3532_v51, %v3528_v43 }
 0x46c   : > { %v828_v54 = vpack.c.bf16 %v827_v52, %v827_v52 }
 0x46e   : > { %3248 = vmatmul.mubr.msk.bf16.vlgmr.msra.gmra.mrb[12].mxu0 %vm624_vm3, %v828_v54 }
 0x46f   : > { %3258 = vmatpush3.bf16.msra.mxu0 %v950_v55  ;;  %3259 = vmatprep.mubr.msk.bf16.mxu0 %vm3632_vm2, %v3631_v20 }
 0x470   : > { %3269 = vmatprep.subr.bf16.mxu0 %v3631_v20 }
 0x471   : > { %v3534_v56 = vpop.eup %3533 }
 0x472   : > { %v944_v57 = vmul.f32 %v3534_v56, %v3530_v46 }
 0x474   : > { %v945_v59 = vpack.c.bf16 %v944_v57, %v944_v57 }
 0x476   : > { %3260 = vmatmul.mubr.msk.bf16.vlgmr.msra.gmra.mrb[16].mxu0 %vm624_vm3, %v945_v59 }
 0x477   : > { %3270 = vmatpush3.bf16.msra.mxu0 %v3495_v58  ;;  %3273 = vmatprep.mubr.msk.bf16.mxu0 %vm3632_vm2, %v3631_v20 }
 0x478   : > { %3271 = vmatprep.subr.bf16.mxu0 %v3631_v20 }
 0x47b   : > { %3272 = vmatpush3.bf16.msra.mxu0 %v3496_v60 }
 0x47c   : > { %3285 = vmatprep.subr.bf16.mxu0 %v3631_v20 }
 0x47e   : > { %3274 = vmatmul.mubr.msk.bf16.vlgmr.msra.gmra.mrb[20].mxu0 %vm507_vm1, %v3792_v44 }
 0x47f   : > { %3286 = vmatpush3.bf16.msra.mxu0 %v3497_v61  ;;  %3289 = vmatprep.mubr.msk.bf16.mxu0 %vm3632_vm2, %v3631_v20 }
 0x480   : > { %3287 = vmatprep.subr.bf16.mxu0 %v3631_v20 }
 0x483   : > { %3288 = vmatpush3.bf16.msra.mxu0 %v3498_v62 }
 0x484   : > { %3299 = vmatprep.subr.bf16.mxu0 %v3631_v20 }
 0x486   : > { %3290 = vmatmul.mubr.msk.bf16.vlgmr.msra.gmra.mrb[24].mxu0 %vm507_vm1, %v3792_v44 }
 0x487   : > { %3301 = vmatprep.mubr.msk.bf16.mxu0 %vm3632_vm2, %v3631_v20 }
 0x541   : > { %v870_v1 = vpop.f32.mrb[12].mxu0 }
 0x542   : > { %876 = vst.msk [vmem:[#allocation6] sm:$0xff] %vm624_vm3, %v870_v1  ;;  %v3249_v2 = vpop.f32.mrb[13].mxu0 }
 0x543   : > { %v873_v3 = vpop.f32.mrb[14].mxu0 }
 0x544   : > { %v3250_v4 = vpop.f32.mrb[15].mxu0 }
 0x549   : > { %v986_v5 = vpop.f32.mrb[16].mxu0  ;;  %v994_v11 = vld [vmem:[#allocation6] sm:$0xff] }
 0x54a   : > { %993 = vst.msk [vmem:[#allocation6 + $0x8] sm:$0xff] %vm624_vm3, %v986_v5  ;;  %v3261_v6 = vpop.f32.mrb[17].mxu0 }
 0x54b   : > { %v989_v7 = vpop.f32.mrb[18].mxu0 }
 0x54c   : > { %v3262_v8 = vpop.f32.mrb[19].mxu0 }
 0x551   : > { %v1106_v10 = vpop.f32.mrb[20].mxu0  ;;  %v995_v12 = vld [vmem:[#allocation6 + $0x8] sm:$0xff] }
 0x552   : > { %v1107_v14 = vadd.f32 %v3002_v9, %v1106_v10  ;;  %v3275_v15 = vpop.f32.mrb[21].mxu0  ;;  %v996_v16 = vpack.c.bf16 %v995_v12, %v994_v11 }
 0x553   : > { %v1109_v17 = vpop.f32.mrb[22].mxu0 }
 0x554   : > { %1113 = vst.msk [vmem:[#allocation3] sm:$0xff] %vm624_vm3, %v1107_v14  ;;  %v1110_v18 = vadd.f32 %v3002_v9, %v1109_v17  ;;  %3266 = vmatmul.mubr.msk.bf16.vlgmr.msra.gmra.mrb[8].mxu1 %vm624_vm3, %v996_v16  ;;  %v3276_v19 = vpop.f32.mrb[23].mxu0 }
 0x555   : > { %3278 = vmatpush3.bf16.msra.mxu1 %v3499_v13  ;;  %3281 = vmatprep.mubr.msk.bf16.mxu1 %vm3632_vm2, %v3631_v20 }
 0x556   : > { %1114 = vst.msk [vmem:[#allocation3 + $0x8] sm:$0xff] %vm624_vm3, %v1110_v18  ;;  %3279 = vmatprep.subr.bf16.mxu1 %v3631_v20 }
 0x559   : > { %3280 = vmatpush3.bf16.msra.mxu1 %v3500_v22  ;;  %v1242_v24 = vpop.f32.mrb[24].mxu0 }
 0x55a   : > { %v1243_v26 = vadd.f32 %v3020_v23, %v1242_v24  ;;  %v3291_v27 = vpop.f32.mrb[25].mxu0  ;;  %3293 = vmatprep.subr.bf16.mxu1 %v3631_v20 }
 0x55b   : > { %v1245_v28 = vpop.f32.mrb[26].mxu0  ;;  %v1251_v51 = vld [vmem:[#allocation3] sm:$0xff] }
 0x55c   : > { %1249 = vst.msk [vmem:[#allocation5] sm:$0xff] %vm624_vm3, %v1243_v26  ;;  %v1246_v30 = vadd.f32 %v3020_v23, %v1245_v28  ;;  %3282 = vmatmul.mubr.msk.bf16.vlgmr.msra.gmra.mrb[12].mxu1 %vm507_vm1, %v3792_v44  ;;  %v3292_v32 = vpop.f32.mrb[27].mxu0  ;;  %v1252_v53 = vpack.c.bf16 %v1251_v51, %v1251_v51 }
 0x55d   : > { %3295 = vmatprep.mubr.msk.bf16.mxu1 %vm3632_vm2, %v3631_v20  ;;  %v1364_v55 = vld [vmem:[#allocation3 + $0x8] sm:$0xff]  ;;  %v3501_v32 = vld [vmem:[%s3729_s18 + $0x20] sm:$0xff]  }
 0x55e   : > { %1250 = vst.msk [vmem:[#allocation5 + $0x8] sm:$0xff] %vm624_vm3, %v1246_v30  ;;  %v1365_v56 = vpack.c.bf16 %v1364_v55, %v1364_v55 }
 0x563   : > { %v1255_v33 = vld [vmem:[#allocation5] sm:$0xff] }
 0x564   : > { %v1256_v25 = vpack.c.bf16 %v1255_v33, %v1255_v33 }
 0x565   : > { %v1368_v19 = vld [vmem:[#allocation5 + $0x8] sm:$0xff] }
 0x566   : > { %v1321_v34 = vsel %vm832_vm4, %v1256_v25, 0  ;;  %v1369_v24 = vpack.c.bf16 %v1368_v19, %v1368_v19  ;;  %v3502_v25 = vld [vmem:[%s3729_s18 + $0x28] sm:$0xff]  }
 0x567   : > { %3300 = vmatpush3.bf16.msra.mxu0 %v1321_v34  ;;  %v3503_v34 = vld [vmem:[%s3729_s18 + $0xa0] sm:$0xff]  }
 0x568   : > { %3311 = vmatprep.subr.bf16.mxu0 %v3631_v20  ;;  %v1434_v27 = vsel %vm832_vm4, %v1369_v24, 0 }
 0x627   : > { %v3896_v35 = vpop.f32.mrb[8].mxu1 }
 0x628   : > { %v3267_v36 = vpop.f32.mrb[9].mxu1 }
 0x629   : > { %v3898_v37 = vpop.f32.mrb[10].mxu1  ;;  %v3504_v36 = vld [vmem:[%s3729_s18 + $0xa8] sm:$0xff]  }
 0x62a   : > { %v3268_v38 = vpop.f32.mrb[11].mxu1 }
 0x62b   : > { %v3028_v38 = vld [vmem:[%s3724_s15 + $0x4] sm:$0xf] }
 0x62f   : > { %v1174_v40 = vpop.f32.mrb[12].mxu1 }
 0x630   : > { %v1175_v41 = vadd.f32 %v3011_v39, %v1174_v40  ;;  %v3283_v42 = vpop.f32.mrb[13].mxu1 }
 0x631   : > { %v1177_v43 = vpop.f32.mrb[14].mxu1 }
 0x632   : > { %1181 = vst.msk [vmem:[#allocation4] sm:$0xff] %vm624_vm3, %v1175_v41  ;;  %v1178_v45 = vadd.f32 %v3011_v39, %v1177_v43  ;;  %v3284_v46 = vpop.f32.mrb[15].mxu1  ;;  %v1486_v39 = vsel %vm832_vm4, %v3028_v38, 0 }
 0x634   : > { %1182 = vst.msk [vmem:[#allocation4 + $0x8] sm:$0xff] %vm624_vm3, %v1178_v45 }
 0x639   : > { %v1253_v47 = vld [vmem:[#allocation4] sm:$0xff] }
 0x63a   : > { %v1254_v48 = vpack.c.bf16 %v1253_v47, %v1253_v47 }
 0x63b   : > { %v1366_v50 = vld [vmem:[#allocation4 + $0x8] sm:$0xff] }
 0x63c   : > { %v1261_v49 = vsel %vm624_vm3, %v1254_v48, 0  ;;  %v1367_v52 = vpack.c.bf16 %v1366_v50, %v1366_v50 }
 0x63d   : > { %3294 = vmatpush3.bf16.xpose.msra.mxu1 %v1261_v49  ;;  %v3035_v49 = vld [vmem:[%s3735_s22 + $0x2] ss:$0 sm:$0xff] }
 0x63e   : > { %3305 = vmatprep.subr.bf16.mxu1 %v3631_v20  ;;  %v1374_v54 = vsel %vm624_vm3, %v1367_v52, 0 }
 0x644   : > { %3296 = vmatmul.mubr.msk.bf16.vlgmr.msra.gmra.mrb[16].mxu1 %vm624_vm3, %v1252_v53  ;;  %v3505_v53 = vld [vmem:[%s3729_s18 + $0x60] sm:$0xff]  }
 0x645   : > { %3306 = vmatpush3.bf16.xpose.msra.mxu1 %v1374_v54  ;;  %3307 = vmatprep.mubr.msk.bf16.mxu1 %vm3632_vm2, %v3631_v20 }
 0x646   : > { %3317 = vmatprep.subr.bf16.mxu1 %v3631_v20 }
 0x64c   : > { %3308 = vmatmul.mubr.msk.bf16.vlgmr.msra.gmra.mrb[20].mxu1 %vm624_vm3, %v1365_v56 }
 0x64d   : > { %3319 = vmatprep.mubr.msk.bf16.mxu1 %vm3632_vm2, %v3631_v20  ;;  %3318 = vmatpush3.bf16.msra.mxu1 %v1486_v39 }
 0x64e   : > { %3331 = vmatprep.subr.bf16.mxu1 %v3631_v20 }
 0x717   : > { %v1297_v57 = vpop.f32.mrb[16].mxu1 }
 0x718   : > { %v1303_v58 = vmul.f32 0.35355338, %v1297_v57  ;;  %v3297_v59 = vpop.f32.mrb[17].mxu1 }
 0x719   : > { %v1300_v60 = vpop.f32.mrb[18].mxu1 }
 0x71a   : > { %v3298_v61 = vpop.f32.mrb[19].mxu1  ;;  %v1304_v62 = vsel %vm3836_vm5, %v1303_v58, -1e+09  ;;  %v3506_v60 = vld [vmem:[%s3729_s18 + $0x68] sm:$0xff]  }
 0x71b   : > { %v1305_v63 = vsel %vm624_vm3, %v1304_v62, -inf  ;;  %v3053_v61 = vld [vmem:[%s3735_s22 + $0xa] ss:$0 sm:$0xff] }
 0x71c   : > { %1306 = vmax.xlane.f32.xlu0 %v1305_v63 }
 0x71f   : > { %v1410_v0 = vpop.f32.mrb[20].mxu1 }
 0x720   : > { %v1416_v1 = vmul.f32 0.35355338, %v1410_v0  ;;  %v3309_v2 = vpop.f32.mrb[21].mxu1 }
 0x721   : > { %v1413_v3 = vpop.f32.mrb[22].mxu1 }
 0x722   : > { %v3310_v4 = vpop.f32.mrb[23].mxu1  ;;  %v1417_v5 = vsel %vm3836_vm5, %v1416_v1, -1e+09 }
 0x723   : > { %v1418_v6 = vsel %vm624_vm3, %v1417_v5, -inf }
 0x724   : > { %1419 = vmax.xlane.f32.xlu1 %v1418_v6 }
 0x7a9   : > { %v1307_v7 = vpop.xlane.xlu0 %1306 }
 0x7aa   : > { %v1308_v8 = vsub.f32 %v1304_v62, %v1307_v7  ;;  %v555_v7 = vsub.s32 4, %v3782_v29 }
 0x7ac   : > { %v1309_v9 = vmul.f32 1.442695, %v1308_v8  ;;  %v556_v8 = vrot.slane %v3786_v31, %v555_v7 }
 0x7ae   : > { %3535 = vpow2.f32 %v1309_v9  ;;  %v1045_v9 = vadd.f32 %v3896_v35, %v556_v8 }
 0x7b1   : > { %v1420_v10 = vpop.xlane.xlu1 %1419 }
 0x7b2   : > { %v1421_v11 = vsub.f32 %v1417_v5, %v1420_v10 }
 0x7b4   : > { %v1422_v12 = vmul.f32 1.442695, %v1421_v11  ;;  %v1046_v11 = vadd.f32 %v3898_v37, %v556_v8  ;;  %v3507_v8 = vld [vmem:[%s3729_s18 + $0x30] sm:$0xff]  }
 0x7b6   : > { %3537 = vpow2.f32 %v1422_v12 }
 0x7b8   : > { %v3536_v13 = vpop.eup %3535 }
 0x7b9   : > { %v1311_v14 = vsel %vm624_vm3, %v3536_v13, 0.0 }
 0x7ba   : > { %1312 = vadd.xlane.f32.xlu0 %v1311_v14 }
 0x7c0   : > { %v3538_v15 = vpop.eup %3537 }
 0x7c1   : > { %v1424_v16 = vsel %vm624_vm3, %v3538_v15, 0.0 }
 0x7c2   : > { %1425 = vadd.xlane.f32.xlu1 %v1424_v16 }
 0x847   : > { %v1313_v17 = vpop.xlane.xlu0 %1312 }
 0x848   : > { %3539 = vrcp.f32 %v1313_v17  ;;  %v3044_v17 = vld [vmem:[%s3735_s22 + $0x6] ss:$0 sm:$0xff] }
 0x84f   : > { %v1426_v18 = vpop.xlane.xlu1 %1425 }
 0x850   : > { %3541 = vrcp.f32 %v1426_v18 }
 0x852   : > { %v3540_v22 = vpop.eup %3539 }
 0x853   : > { %v1315_v23 = vmul.f32 %v3540_v22, %v3536_v13 }
 0x855   : > { %v1316_v26 = vpack.c.bf16 %v1315_v23, %v1315_v23 }
 0x857   : > { %3302 = vmatmul.mubr.msk.bf16.vlgmr.msra.gmra.mrb[28].mxu0 %vm624_vm3, %v1316_v26 }
 0x858   : > { %3312 = vmatpush3.bf16.msra.mxu0 %v1434_v27  ;;  %3313 = vmatprep.mubr.msk.bf16.mxu0 %vm3632_vm2, %v3631_v20 }
 0x859   : > { %3323 = vmatprep.subr.bf16.mxu0 %v3631_v20 }
 0x85a   : > { %v3542_v28 = vpop.eup %3541 }
 0x85b   : > { %v1428_v30 = vmul.f32 %v3542_v28, %v3538_v15 }
 0x85d   : > { %v1429_v33 = vpack.c.bf16 %v1428_v30, %v1428_v30 }
 0x85f   : > { %3314 = vmatmul.mubr.msk.bf16.vlgmr.msra.gmra.mrb[32].mxu0 %vm624_vm3, %v1429_v33 }
 0x860   : > { %3324 = vmatpush3.bf16.msra.mxu0 %v3501_v32  ;;  %3327 = vmatprep.mubr.msk.bf16.mxu0 %vm3632_vm2, %v3631_v20 }
 0x861   : > { %3325 = vmatprep.subr.bf16.mxu0 %v3631_v20 }
 0x864   : > { %3326 = vmatpush3.bf16.msra.mxu0 %v3502_v25 }
 0x865   : > { %3339 = vmatprep.subr.bf16.mxu0 %v3631_v20 }
 0x867   : > { %3328 = vmatmul.mubr.msk.bf16.vlgmr.msra.gmra.mrb[36].mxu0 %vm507_vm1, %v3792_v44 }
 0x868   : > { %3340 = vmatpush3.bf16.msra.mxu0 %v3503_v34  ;;  %3343 = vmatprep.mubr.msk.bf16.mxu0 %vm3632_vm2, %v3631_v20 }
 0x869   : > { %3341 = vmatprep.subr.bf16.mxu0 %v3631_v20 }
 0x86c   : > { %3342 = vmatpush3.bf16.msra.mxu0 %v3504_v36 }
 0x86d   : > { %3353 = vmatprep.subr.bf16.mxu0 %v3631_v20 }
 0x86f   : > { %3344 = vmatmul.mubr.msk.bf16.vlgmr.msra.gmra.mrb[40].mxu0 %vm507_vm1, %v3792_v44 }
 0x870   : > { %3355 = vmatprep.mubr.msk.bf16.mxu0 %vm3632_vm2, %v3631_v20 }
 0x92a   : > { %v1357_v40 = vpop.f32.mrb[28].mxu0 }
 0x92b   : > { %1363 = vst.msk [vmem:[#allocation6] sm:$0xff] %vm624_vm3, %v1357_v40  ;;  %v3303_v41 = vpop.f32.mrb[29].mxu0 }
 0x92c   : > { %v1360_v42 = vpop.f32.mrb[30].mxu0 }
 0x92d   : > { %v3304_v43 = vpop.f32.mrb[31].mxu0 }
 0x932   : > { %v1470_v45 = vpop.f32.mrb[32].mxu0  ;;  %v1477_v51 = vld [vmem:[#allocation6] sm:$0xff] }
 0x933   : > { %1476 = vst.msk [vmem:[#allocation6 + $0x8] sm:$0xff] %vm624_vm3, %v1470_v45  ;;  %v3315_v46 = vpop.f32.mrb[33].mxu0 }
 0x934   : > { %v1473_v47 = vpop.f32.mrb[34].mxu0 }
 0x935   : > { %v3316_v48 = vpop.f32.mrb[35].mxu0 }
 0x93a   : > { %v1590_v50 = vpop.f32.mrb[36].mxu0  ;;  %v1478_v52 = vld [vmem:[#allocation6 + $0x8] sm:$0xff] }
 0x93b   : > { %v1591_v54 = vadd.f32 %v3035_v49, %v1590_v50  ;;  %v3329_v55 = vpop.f32.mrb[37].mxu0  ;;  %v1479_v56 = vpack.c.bf16 %v1478_v52, %v1477_v51 }
 0x93c   : > { %v1593_v57 = vpop.f32.mrb[38].mxu0 }
 0x93d   : > { %1597 = vst.msk [vmem:[#allocation3] sm:$0xff] %vm624_vm3, %v1591_v54  ;;  %v1594_v58 = vadd.f32 %v3035_v49, %v1593_v57  ;;  %3320 = vmatmul.mubr.msk.bf16.vlgmr.msra.gmra.mrb[24].mxu1 %vm624_vm3, %v1479_v56  ;;  %v3330_v59 = vpop.f32.mrb[39].mxu0 }
 0x93e   : > { %3332 = vmatpush3.bf16.msra.mxu1 %v3505_v53  ;;  %3335 = vmatprep.mubr.msk.bf16.mxu1 %vm3632_vm2, %v3631_v20 }
 0x93f   : > { %1598 = vst.msk [vmem:[#allocation3 + $0x8] sm:$0xff] %vm624_vm3, %v1594_v58  ;;  %3333 = vmatprep.subr.bf16.mxu1 %v3631_v20 }
 0x942   : > { %3334 = vmatpush3.bf16.msra.mxu1 %v3506_v60  ;;  %v1726_v62 = vpop.f32.mrb[40].mxu0 }
 0x943   : > { %v1727_v63 = vadd.f32 %v3053_v61, %v1726_v62  ;;  %v3345_v0 = vpop.f32.mrb[41].mxu0  ;;  %3347 = vmatprep.subr.bf16.mxu1 %v3631_v20 }
 0x944   : > { %v1729_v1 = vpop.f32.mrb[42].mxu0  ;;  %v1735_v28 = vld [vmem:[#allocation3] sm:$0xff] }
 0x945   : > { %1733 = vst.msk [vmem:[#allocation5] sm:$0xff] %vm624_vm3, %v1727_v63  ;;  %v1730_v2 = vadd.f32 %v3053_v61, %v1729_v1  ;;  %3336 = vmatmul.mubr.msk.bf16.vlgmr.msra.gmra.mrb[28].mxu1 %vm507_vm1, %v3792_v44  ;;  %v3346_v3 = vpop.f32.mrb[43].mxu0  ;;  %v1736_v32 = vpack.c.bf16 %v1735_v28, %v1735_v28 }
 0x946   : > { %3349 = vmatprep.mubr.msk.bf16.mxu1 %vm3632_vm2, %v3631_v20  ;;  %v1848_v25 = vld [vmem:[#allocation3 + $0x8] sm:$0xff] }
 0x947   : > { %1734 = vst.msk [vmem:[#allocation5 + $0x8] sm:$0xff] %vm624_vm3, %v1730_v2  ;;  %v1849_v34 = vpack.c.bf16 %v1848_v25, %v1848_v25 }
 0x94c   : > { %v1739_v4 = vld [vmem:[#allocation5] sm:$0xff] }
 0x94d   : > { %v1740_v5 = vpack.c.bf16 %v1739_v4, %v1739_v4 }
 0x94e   : > { %v1852_v0 = vld [vmem:[#allocation5 + $0x8] sm:$0xff] }
 0x94f   : > { %v1805_v6 = vsel %vm832_vm4, %v1740_v5, 0  ;;  %v1853_v3 = vpack.c.bf16 %v1852_v0, %v1852_v0 }
 0x950   : > { %3354 = vmatpush3.bf16.msra.mxu0 %v1805_v6 }
 0x951   : > { %3365 = vmatprep.subr.bf16.mxu0 %v3631_v20  ;;  %v1918_v5 = vsel %vm832_vm4, %v1853_v3, 0 }
 0xa10   : > { %v1522_v10 = vpop.f32.mrb[24].mxu1 }
 0xa11   : > { %v3973_v12 = vadd.f32 %v1522_v10, %v1045_v9  ;;  %v3321_v13 = vpop.f32.mrb[25].mxu1  ;;  %v3508_v10 = vld [vmem:[%s3729_s18 + $0x38] sm:$0xff]  }
 0xa12   : > { %v1525_v14 = vpop.f32.mrb[26].mxu1  ;;  %v3510_v13 = vld [vmem:[%s3729_s18 + $0xb8] sm:$0xff]  }
 0xa13   : > { %v3975_v15 = vadd.f32 %v1525_v14, %v1046_v11  ;;  %v3322_v16 = vpop.f32.mrb[27].mxu1  ;;  %v3509_v11 = vld [vmem:[%s3729_s18 + $0xb0] sm:$0xff]   ;;  %v3061_v14 = vld [vmem:[%s3724_s15 + $0x8] sm:$0xf] }
 0xa14   : > { %v1970_v16 = vsel %vm832_vm4, %v3061_v14, 0 }
 0xa18   : > { %v1658_v18 = vpop.f32.mrb[28].mxu1 }
 0xa19   : > { %v1659_v19 = vadd.f32 %v3044_v17, %v1658_v18  ;;  %v3337_v22 = vpop.f32.mrb[29].mxu1 }
 0xa1a   : > { %v1661_v23 = vpop.f32.mrb[30].mxu1 }
 0xa1b   : > { %1665 = vst.msk [vmem:[#allocation4] sm:$0xff] %vm624_vm3, %v1659_v19  ;;  %v1662_v31 = vadd.f32 %v3044_v17, %v1661_v23  ;;  %v3338_v24 = vpop.f32.mrb[31].mxu1 }
 0xa1d   : > { %1666 = vst.msk [vmem:[#allocation4 + $0x8] sm:$0xff] %vm624_vm3, %v1662_v31 }
 0xa22   : > { %v1737_v35 = vld [vmem:[#allocation4] sm:$0xff] }
 0xa23   : > { %v1738_v37 = vpack.c.bf16 %v1737_v35, %v1737_v35 }
 0xa24   : > { %v1850_v27 = vld [vmem:[#allocation4 + $0x8] sm:$0xff] }
 0xa25   : > { %v1745_v26 = vsel %vm624_vm3, %v1738_v37, 0  ;;  %v1851_v30 = vpack.c.bf16 %v1850_v27, %v1850_v27  ;;  %v3068_v37 = vld [vmem:[%s3735_s22 + $0x3] ss:$0 sm:$0xff] }
 0xa26   : > { %3348 = vmatpush3.bf16.xpose.msra.mxu1 %v1745_v26 }
 0xa27   : > { %3359 = vmatprep.subr.bf16.mxu1 %v3631_v20  ;;  %v1858_v33 = vsel %vm624_vm3, %v1851_v30, 0  ;;  %v3511_v30 = vld [vmem:[%s3729_s18 + $0x70] sm:$0xff]  }
 0xa2d   : > { %3350 = vmatmul.mubr.msk.bf16.vlgmr.msra.gmra.mrb[32].mxu1 %vm624_vm3, %v1736_v32 }
 0xa2e   : > { %3360 = vmatpush3.bf16.xpose.msra.mxu1 %v1858_v33  ;;  %3361 = vmatprep.mubr.msk.bf16.mxu1 %vm3632_vm2, %v3631_v20 }
 0xa2f   : > { %3371 = vmatprep.subr.bf16.mxu1 %v3631_v20 }
 0xa35   : > { %3362 = vmatmul.mubr.msk.bf16.vlgmr.msra.gmra.mrb[36].mxu1 %vm624_vm3, %v1849_v34 }
 0xa36   : > { %3373 = vmatprep.mubr.msk.bf16.mxu1 %vm3632_vm2, %v3631_v20  ;;  %3372 = vmatpush3.bf16.msra.mxu1 %v1970_v16 }
 0xa37   : > { %3385 = vmatprep.subr.bf16.mxu1 %v3631_v20 }
 0xb00   : > { %v1781_v36 = vpop.f32.mrb[32].mxu1 }
 0xb01   : > { %v1787_v38 = vmul.f32 0.35355338, %v1781_v36  ;;  %v3351_v39 = vpop.f32.mrb[33].mxu1 }
 0xb02   : > { %v1784_v40 = vpop.f32.mrb[34].mxu1  ;;  %v3512_v39 = vld [vmem:[%s3729_s18 + $0x78] sm:$0xff]   ;;  %s2742_s18 = scalar_lea.vmem (!%p3110_p10), [#allocation2], %s2741_s27 }
 0xb03   : > { %v3352_v41 = vpop.f32.mrb[35].mxu1  ;;  %v1788_v42 = vsel %vm3836_vm5, %v1787_v38, -1e+09  ;;  %v3086_v40 = vld [vmem:[%s3735_s22 + $0xb] ss:$0 sm:$0xff] }
 0xb04   : > { %v1789_v43 = vsel %vm624_vm3, %v1788_v42, -inf }
 0xb05   : > { %1790 = vmax.xlane.f32.xlu0 %v1789_v43 }
 0xb08   : > { %v1894_v45 = vpop.f32.mrb[36].mxu1 }
 0xb09   : > { %v1900_v46 = vmul.f32 0.35355338, %v1894_v45  ;;  %v3363_v47 = vpop.f32.mrb[37].mxu1 }
 0xb0a   : > { %v1897_v48 = vpop.f32.mrb[38].mxu1 }
 0xb0b   : > { %v3364_v49 = vpop.f32.mrb[39].mxu1  ;;  %v1901_v50 = vsel %vm3836_vm5, %v1900_v46, -1e+09 }
 0xb0c   : > { %v1902_v51 = vsel %vm624_vm3, %v1901_v50, -inf }
 0xb0d   : > { %1903 = vmax.xlane.f32.xlu1 %v1902_v51 }
 0xb92   : > { %v1791_v52 = vpop.xlane.xlu0 %1790 }
 0xb93   : > { %v1792_v53 = vsub.f32 %v1788_v42, %v1791_v52 }
 0xb95   : > { %v1793_v54 = vmul.f32 1.442695, %v1792_v53 }
 0xb97   : > { %3543 = vpow2.f32 %v1793_v54 }
 0xb9a   : > { %v1904_v55 = vpop.xlane.xlu1 %1903 }
 0xb9b   : > { %v1905_v56 = vsub.f32 %v1901_v50, %v1904_v55 }
 0xb9d   : > { %v1906_v57 = vmul.f32 1.442695, %v1905_v56  ;;  %v3077_v56 = vld [vmem:[%s3735_s22 + $0x7] ss:$0 sm:$0xff] }
 0xb9f   : > { %3545 = vpow2.f32 %v1906_v57 }
 0xba1   : > { %v3544_v58 = vpop.eup %3543 }
 0xba2   : > { %v1795_v59 = vsel %vm624_vm3, %v3544_v58, 0.0 }
 0xba3   : > { %1796 = vadd.xlane.f32.xlu0 %v1795_v59 }
 0xba9   : > { %v3546_v60 = vpop.eup %3545 }
 0xbaa   : > { %v1908_v61 = vsel %vm624_vm3, %v3546_v60, 0.0 }
 0xbab   : > { %1909 = vadd.xlane.f32.xlu1 %v1908_v61 }
 0xc30   : > { %v1797_v62 = vpop.xlane.xlu0 %1796 }
 0xc31   : > { %3547 = vrcp.f32 %v1797_v62 }
 0xc38   : > { %v1910_v63 = vpop.xlane.xlu1 %1909 }
 0xc39   : > { %3549 = vrcp.f32 %v1910_v63 }
 0xc3b   : > { %v3548_v1 = vpop.eup %3547 }
 0xc3c   : > { %v1799_v2 = vmul.f32 %v3548_v1, %v3544_v58 }
 0xc3e   : > { %v1800_v4 = vpack.c.bf16 %v1799_v2, %v1799_v2 }
 0xc40   : > { %3356 = vmatmul.mubr.msk.bf16.vlgmr.msra.gmra.mrb[44].mxu0 %vm624_vm3, %v1800_v4 }
 0xc41   : > { %3366 = vmatpush3.bf16.msra.mxu0 %v1918_v5  ;;  %3367 = vmatprep.mubr.msk.bf16.mxu0 %vm3632_vm2, %v3631_v20 }
 0xc42   : > { %3377 = vmatprep.subr.bf16.mxu0 %v3631_v20 }
 0xc43   : > { %v3550_v6 = vpop.eup %3549 }
 0xc44   : > { %v1912_v7 = vmul.f32 %v3550_v6, %v3546_v60 }
 0xc46   : > { %v1913_v9 = vpack.c.bf16 %v1912_v7, %v1912_v7 }
 0xc48   : > { %3368 = vmatmul.mubr.msk.bf16.vlgmr.msra.gmra.mrb[48].mxu0 %vm624_vm3, %v1913_v9 }
 0xc49   : > { %3378 = vmatpush3.bf16.msra.mxu0 %v3507_v8  ;;  %3381 = vmatprep.mubr.msk.bf16.mxu0 %vm3632_vm2, %v3631_v20 }
 0xc4a   : > { %3379 = vmatprep.subr.bf16.mxu0 %v3631_v20 }
 0xc4d   : > { %3380 = vmatpush3.bf16.msra.mxu0 %v3508_v10 }
 0xc4e   : > { %3393 = vmatprep.subr.bf16.mxu0 %v3631_v20 }
 0xc50   : > { %3382 = vmatmul.mubr.msk.bf16.vlgmr.msra.gmra.mrb[52].mxu0 %vm507_vm1, %v3792_v44 }
 0xc51   : > { %3394 = vmatpush3.bf16.msra.mxu0 %v3509_v11  ;;  %3397 = vmatprep.mubr.msk.bf16.mxu0 %vm3632_vm2, %v3631_v20 }
 0xc52   : > { %3395 = vmatprep.subr.bf16.mxu0 %v3631_v20 }
 0xc55   : > { %3396 = vmatpush3.bf16.msra.mxu0 %v3510_v13 }
 0xc56   : > { %3407 = vmatprep.subr.bf16.mxu0 %v3631_v20 }
 0xc58   : > { %3398 = vmatmul.mubr.msk.bf16.vlgmr.msra.gmra.mrb[56].mxu0 %vm507_vm1, %v3792_v44 }
 0xc59   : > { %3409 = vmatprep.mubr.msk.bf16.mxu0 %vm3632_vm2, %v3631_v20 }
 0xd13   : > { %v1841_v17 = vpop.f32.mrb[44].mxu0 }
 0xd14   : > { %1847 = vst.msk [vmem:[#allocation6] sm:$0xff] %vm624_vm3, %v1841_v17  ;;  %v3357_v18 = vpop.f32.mrb[45].mxu0 }
 0xd15   : > { %v1844_v19 = vpop.f32.mrb[46].mxu0 }
 0xd16   : > { %v3358_v22 = vpop.f32.mrb[47].mxu0 }
 0xd1b   : > { %v1954_v23 = vpop.f32.mrb[48].mxu0  ;;  %v1961_v27 = vld [vmem:[#allocation6] sm:$0xff] }
 0xd1c   : > { %1960 = vst.msk [vmem:[#allocation6 + $0x8] sm:$0xff] %vm624_vm3, %v1954_v23  ;;  %v3369_v31 = vpop.f32.mrb[49].mxu0 }
 0xd1d   : > { %v1957_v24 = vpop.f32.mrb[50].mxu0 }
 0xd1e   : > { %v3370_v35 = vpop.f32.mrb[51].mxu0 }
 0xd23   : > { %v2074_v26 = vpop.f32.mrb[52].mxu0  ;;  %v1962_v28 = vld [vmem:[#allocation6 + $0x8] sm:$0xff] }
 0xd24   : > { %v2075_v32 = vadd.f32 %v3068_v37, %v2074_v26  ;;  %v3383_v33 = vpop.f32.mrb[53].mxu0  ;;  %v1963_v25 = vpack.c.bf16 %v1962_v28, %v1961_v27 }
 0xd25   : > { %v2077_v34 = vpop.f32.mrb[54].mxu0 }
 0xd26   : > { %2081 = vst.msk [vmem:[#allocation3] sm:$0xff] %vm624_vm3, %v2075_v32  ;;  %v2078_v36 = vadd.f32 %v3068_v37, %v2077_v34  ;;  %3374 = vmatmul.mubr.msk.bf16.vlgmr.msra.gmra.mrb[40].mxu1 %vm624_vm3, %v1963_v25  ;;  %v3384_v38 = vpop.f32.mrb[55].mxu0 }
 0xd27   : > { %3386 = vmatpush3.bf16.msra.mxu1 %v3511_v30  ;;  %3389 = vmatprep.mubr.msk.bf16.mxu1 %vm3632_vm2, %v3631_v20 }
 0xd28   : > { %2082 = vst.msk [vmem:[#allocation3 + $0x8] sm:$0xff] %vm624_vm3, %v2078_v36  ;;  %3387 = vmatprep.subr.bf16.mxu1 %v3631_v20 }
 0xd2b   : > { %3388 = vmatpush3.bf16.msra.mxu1 %v3512_v39  ;;  %v2210_v41 = vpop.f32.mrb[56].mxu0 }
 0xd2c   : > { %v2211_v42 = vadd.f32 %v3086_v40, %v2210_v41  ;;  %v3399_v43 = vpop.f32.mrb[57].mxu0  ;;  %3401 = vmatprep.subr.bf16.mxu1 %v3631_v20 }
 0xd2d   : > { %v2213_v45 = vpop.f32.mrb[58].mxu0 }
 0xd2e   : > { %2217 = vst.msk [vmem:[#allocation5] sm:$0xff] %vm624_vm3, %v2211_v42  ;;  %v2214_v46 = vadd.f32 %v3086_v40, %v2213_v45  ;;  %3390 = vmatmul.mubr.msk.bf16.vlgmr.msra.gmra.mrb[44].mxu1 %vm507_vm1, %v3792_v44  ;;  %v3400_v47 = vpop.f32.mrb[59].mxu0 }
 0xd2f   : > { %3403 = vmatprep.mubr.msk.bf16.mxu1 %vm3632_vm2, %v3631_v20  ;;  %v2332_v5 = vld [vmem:[#allocation3 + $0x8] sm:$0xff]  ;;  %v3094_v47 = vld [vmem:[%s3724_s15 + $0xc] sm:$0xf]  ;;  %s3111_s15 = sld [smem:[#allocation9 + $0x1]] (!%p3110_p10) }
 0xd30   : > { %2218 = vst.msk [vmem:[#allocation5 + $0x8] sm:$0xff] %vm624_vm3, %v2214_v46  ;;  %v2333_v6 = vpack.c.bf16 %v2332_v5, %v2332_v5 }
 0xd35   : > { %v2223_v48 = vld [vmem:[#allocation5] sm:$0xff]  ;;  %s2747_s22 = scalar_lea.vmem (!%p3110_p10), [#allocation2], %s3111_s15 }
 0xd36   : > { %v2224_v49 = vpack.c.bf16 %v2223_v48, %v2223_v48  ;;  %v2454_v48 = vsel %vm832_vm4, %v3094_v47, 0  ;;  %v3520_v47 = vld [vmem:[%s3755_s30 + $0x28] sm:$0xff]  }
 0xd37   : > { %v2336_v36 = vld [vmem:[#allocation5 + $0x8] sm:$0xff] }
 0xd38   : > { %v2289_v50 = vsel %vm832_vm4, %v2224_v49, 0  ;;  %v2337_v40 = vpack.c.bf16 %v2336_v36, %v2336_v36 }
 0xd39   : > { %3408 = vmatpush3.bf16.msra.mxu0 %v2289_v50 }
 0xd3a   : > { %3419 = vmatprep.subr.bf16.mxu0 %v3631_v20  ;;  %v2402_v42 = vsel %vm832_vm4, %v2337_v40, 0 }
 0xdf9   : > { %v2006_v51 = vpop.f32.mrb[40].mxu1 }
 0xdfa   : > { %v4047_v52 = vadd.f32 %v2006_v51, %v3973_v12  ;;  %v3375_v53 = vpop.f32.mrb[41].mxu1 }
 0xdfb   : > { %v2009_v54 = vpop.f32.mrb[42].mxu1 }
 0xdfc   : > { %v4050_v44 = vadd.f32 %v2009_v54, %v3975_v15  ;;  %v3376_v55 = vpop.f32.mrb[43].mxu1  ;;  %v2219_v15 = vld [vmem:[#allocation3] sm:$0xff] }
 0xdfd   : > { %v2220_v3 = vpack.c.bf16 %v2219_v15, %v2219_v15 }
 0xe01   : > { %v2142_v57 = vpop.f32.mrb[44].mxu1 }
 0xe02   : > { %v2143_v58 = vadd.f32 %v3077_v56, %v2142_v57  ;;  %v3391_v59 = vpop.f32.mrb[45].mxu1 }
 0xe03   : > { %v2145_v60 = vpop.f32.mrb[46].mxu1 }
 0xe04   : > { %2149 = vst.msk [vmem:[#allocation4] sm:$0xff] %vm624_vm3, %v2143_v58  ;;  %v2146_v61 = vadd.f32 %v3077_v56, %v2145_v60  ;;  %v3392_v62 = vpop.f32.mrb[47].mxu1 }
 0xe06   : > { %2150 = vst.msk [vmem:[#allocation4 + $0x8] sm:$0xff] %vm624_vm3, %v2146_v61 }
 0xe0b   : > { %v2221_v63 = vld [vmem:[#allocation4] sm:$0xff] }
 0xe0c   : > { %v2222_v12 = vpack.c.bf16 %v2221_v63, %v2221_v63 }
 0xe0d   : > { %v2334_v1 = vld [vmem:[#allocation4 + $0x8] sm:$0xff] }
 0xe0e   : > { %v2229_v0 = vsel %vm624_vm3, %v2222_v12, 0  ;;  %v2335_v2 = vpack.c.bf16 %v2334_v1, %v2334_v1 }
 0xe0f   : > { %3402 = vmatpush3.bf16.xpose.msra.mxu1 %v2229_v0  ;;  %v3571_v0 = vld [vmem:[#allocation2] sm:$0xff] }
 0xe10   : > { %3413 = vmatprep.subr.bf16.mxu1 %v3631_v20  ;;  %v2342_v4 = vsel %vm624_vm3, %v2335_v2, 0 }
 0xe16   : > { %3404 = vmatmul.mubr.msk.bf16.vlgmr.msra.gmra.mrb[48].mxu1 %vm624_vm3, %v2220_v3  ;;  %v3572_v3 = vld [vmem:[#allocation2 + $0x8] sm:$0xff] }
 0xe17   : > { %3414 = vmatpush3.bf16.xpose.msra.mxu1 %v2342_v4  ;;  %3415 = vmatprep.mubr.msk.bf16.mxu1 %vm3632_vm2, %v3631_v20 }
 0xe18   : > { %3425 = vmatprep.subr.bf16.mxu1 %v3631_v20 }
 0xe1e   : > { %3416 = vmatmul.mubr.msk.bf16.vlgmr.msra.gmra.mrb[52].mxu1 %vm624_vm3, %v2333_v6 }
 0xe1f   : > { %3427 = vmatprep.mubr.msk.bf16.mxu1 %vm3632_vm2, %v3631_v20  ;;  %3426 = vmatpush3.bf16.msra.mxu1 %v2454_v48  ;;  %v3521_v48 = vld [vmem:[%s3755_s30 + $0x30] sm:$0xff]  }
 0xe20   : > { %3439 = vmatprep.subr.bf16.mxu1 %v3631_v20 }
 0xee9   : > { %v2265_v7 = vpop.f32.mrb[48].mxu1 }
 0xeea   : > { %v2271_v8 = vmul.f32 0.35355338, %v2265_v7  ;;  %v3405_v9 = vpop.f32.mrb[49].mxu1 }
 0xeeb   : > { %v2268_v10 = vpop.f32.mrb[50].mxu1 }
 0xeec   : > { %v3406_v11 = vpop.f32.mrb[51].mxu1  ;;  %v2272_v13 = vsel %vm3836_vm5, %v2271_v8, -1e+09 }
 0xeed   : > { %v2273_v14 = vsel %vm624_vm3, %v2272_v13, -inf }
 0xeee   : > { %2274 = vmax.xlane.f32.xlu0 %v2273_v14 }
 0xef1   : > { %v2378_v16 = vpop.f32.mrb[52].mxu1 }
 0xef2   : > { %v2384_v17 = vmul.f32 0.35355338, %v2378_v16  ;;  %v3417_v18 = vpop.f32.mrb[53].mxu1 }
 0xef3   : > { %v2381_v19 = vpop.f32.mrb[54].mxu1  ;;  %v3514_v18 = vld [vmem:[%s3749_s28 + $0x8] sm:$0xff]  }
 0xef4   : > { %v3418_v22 = vpop.f32.mrb[55].mxu1  ;;  %v2385_v23 = vsel %vm3836_vm5, %v2384_v17, -1e+09  ;;  %v3513_v17 = vld [vmem:[%s3749_s28] sm:$0xff]  }
 0xef5   : > { %v2386_v31 = vsel %vm624_vm3, %v2385_v23, -inf }
 0xef6   : > { %2387 = vmax.xlane.f32.xlu1 %v2386_v31 }
 0xf7b   : > { %v2275_v24 = vpop.xlane.xlu0 %2274 }
 0xf7c   : > { %v2276_v35 = vsub.f32 %v2272_v13, %v2275_v24 }
 0xf7e   : > { %v2277_v37 = vmul.f32 1.442695, %v2276_v35 }
 0xf80   : > { %3551 = vpow2.f32 %v2277_v37  ;;  %v2529_v37 = vsub.s32 2, %v3782_v29 }
 0xf83   : > { %v2388_v26 = vpop.xlane.xlu1 %2387 }
 0xf84   : > { %v2389_v27 = vsub.f32 %v2385_v23, %v2388_v26  ;;  %v4108_v26 = vld [vmem:[%s3740_s25] sm:$0x3f] }
 0xf86   : > { %v2390_v28 = vmul.f32 1.442695, %v2389_v27  ;;  %v2530_v27 = vrot.slane %v4108_v26, %v2529_v37 }
 0xf88   : > { %3553 = vpow2.f32 %v2390_v28  ;;  %v2535_v28 = vsub.s32 3, %v3782_v29 }
 0xf8a   : > { %v3552_v30 = vpop.eup %3551 }
 0xf8b   : > { %v2279_v32 = vsel %vm624_vm3, %v3552_v30, 0.0 }
 0xf8c   : > { %2280 = vadd.xlane.f32.xlu0 %v2279_v32 }
 0xf92   : > { %v3554_v33 = vpop.eup %3553 }
 0xf93   : > { %v2392_v25 = vsel %vm624_vm3, %v3554_v33, 0.0 }
 0xf94   : > { %2393 = vadd.xlane.f32.xlu1 %v2392_v25 }
0x1019   : > { %v2281_v21 = vpop.xlane.xlu0 %2280 }
0x101a   : > { %3555 = vrcp.f32 %v2281_v21 }
0x1021   : > { %v2394_v34 = vpop.xlane.xlu1 %2393 }
0x1022   : > { %3557 = vrcp.f32 %v2394_v34  ;;  %v2536_v34 = vrot.slane %v4108_v26, %v2535_v28 }
0x1024   : > { %v3556_v38 = vpop.eup %3555 }
0x1025   : > { %v2283_v39 = vmul.f32 %v3556_v38, %v3552_v30 }
0x1027   : > { %v2284_v41 = vpack.c.bf16 %v2283_v39, %v2283_v39 }
0x1029   : > { %3410 = vmatmul.mubr.msk.bf16.vlgmr.msra.gmra.mrb[60].mxu0 %vm624_vm3, %v2284_v41  ;;  %v3515_v41 = vld [vmem:[%s3755_s30] sm:$0xff]  }
0x102a   : > { %3420 = vmatpush3.bf16.msra.mxu0 %v2402_v42  ;;  %3421 = vmatprep.mubr.msk.bf16.mxu0 %vm3632_vm2, %v3631_v20  ;;  %v3516_v42 = vld [vmem:[%s3755_s30 + $0x8] sm:$0xff]  }
0x102b   : > { %3431 = vmatprep.subr.bf16.mxu0 %v3631_v20 }
0x102c   : > { %v3558_v43 = vpop.eup %3557 }
0x102d   : > { %v2396_v45 = vmul.f32 %v3558_v43, %v3554_v33  ;;  %v3517_v43 = vld [vmem:[%s3755_s30 + $0x10] sm:$0xff]  }
0x102f   : > { %v2397_v46 = vpack.c.bf16 %v2396_v45, %v2396_v45  ;;  %v3518_v45 = vld [vmem:[%s3755_s30 + $0x18] sm:$0xff]  }
0x1031   : > { %3422 = vmatmul.mubr.msk.bf16.vlgmr.msra.gmra.mrb[64].mxu0 %vm624_vm3, %v2397_v46  ;;  %v3519_v46 = vld [vmem:[%s3755_s30 + $0x20] sm:$0xff]  }
0x1032   : > { %3435 = vmatprep.mubr.msk.bf16.mxu0 %vm3632_vm2, %v3631_v20  ;;  %3432 = vmatpush3.bf16.msra.mxu0 %v3513_v17 }
0x1033   : > { %3433 = vmatprep.subr.bf16.mxu0 %v3631_v20 }
0x1036   : > { %3434 = vmatpush3.bf16.msra.mxu0 %v3514_v18 }
0x10fc   : > { %v2325_v49 = vpop.f32.mrb[60].mxu0 }
0x10fd   : > { %2331 = vst.msk [vmem:[#allocation6] sm:$0xff] %vm624_vm3, %v2325_v49  ;;  %v3411_v50 = vpop.f32.mrb[61].mxu0  ;;  %v3522_v49 = vld [vmem:[%s3755_s30 + $0x38] sm:$0xff]  }
0x10fe   : > { %v2328_v51 = vpop.f32.mrb[62].mxu0  ;;  %v3096_v50 = vld [vmem:[%s477_s14] ss:$0 sm:$0xff] }
0x10ff   : > { %v3412_v53 = vpop.f32.mrb[63].mxu0 }
0x1104   : > { %v2438_v54 = vpop.f32.mrb[64].mxu0  ;;  %v2445_v58 = vld [vmem:[#allocation6] sm:$0xff] }
0x1105   : > { %2444 = vst.msk [vmem:[#allocation6 + $0x8] sm:$0xff] %vm624_vm3, %v2438_v54  ;;  %v3423_v55 = vpop.f32.mrb[65].mxu0 }
0x1106   : > { %v2441_v56 = vpop.f32.mrb[66].mxu0 }
0x1107   : > { %v3424_v57 = vpop.f32.mrb[67].mxu0 }
0x110c   : > { %v2446_v59 = vld [vmem:[#allocation6 + $0x8] sm:$0xff] }
0x110d   : > { %v2447_v60 = vpack.c.bf16 %v2446_v59, %v2445_v58 }
0x110f   : > { %3428 = vmatmul.mubr.msk.bf16.vlgmr.msra.gmra.mrb[56].mxu1 %vm624_vm3, %v2447_v60 }
0x1110   : > { %3455 = vmatprep.mubr.msk.bf16.mxu1 %vm3632_vm2, %v3631_v20  ;;  %3440 = vmatpush3.bf16.msra.mxu1 %v3515_v41 }
0x1111   : > { %3441 = vmatprep.subr.bf16.mxu1 %v3631_v20 }
0x1114   : > { %3442 = vmatpush3.bf16.msra.mxu1 %v3516_v42 }
0x1115   : > { %3443 = vmatprep.subr.bf16.mxu1 %v3631_v20 }
0x1118   : > { %3444 = vmatpush3.bf16.msra.mxu1 %v3517_v43 }
0x1119   : > { %3445 = vmatprep.subr.bf16.mxu1 %v3631_v20 }
0x111c   : > { %3446 = vmatpush3.bf16.msra.mxu1 %v3518_v45 }
0x111d   : > { %3447 = vmatprep.subr.bf16.mxu1 %v3631_v20 }
0x1120   : > { %3448 = vmatpush3.bf16.msra.mxu1 %v3519_v46 }
0x1121   : > { %3449 = vmatprep.subr.bf16.mxu1 %v3631_v20 }
0x1124   : > { %3450 = vmatpush3.bf16.msra.mxu1 %v3520_v47 }
0x1125   : > { %3451 = vmatprep.subr.bf16.mxu1 %v3631_v20 }
0x1128   : > { %3452 = vmatpush3.bf16.msra.mxu1 %v3521_v48 }
0x1129   : > { %3453 = vmatprep.subr.bf16.mxu1 %v3631_v20 }
0x112c   : > { %3454 = vmatpush3.bf16.msra.mxu1 %v3522_v49 }
0x11e2   : > { %v2490_v61 = vpop.f32.mrb[56].mxu1 }
0x11e3   : > { %v2497_v62 = vadd.f32 %v2490_v61, %v4047_v52  ;;  %v3429_v63 = vpop.f32.mrb[57].mxu1 }
0x11e4   : > { %v2493_v12 = vpop.f32.mrb[58].mxu1 }
0x11e5   : > { %v4090_v1 = vadd.f32 %v3571_v0, %v2497_v62  ;;  %v2498_v15 = vadd.f32 %v2493_v12, %v4050_v44  ;;  %v3430_v2 = vpop.f32.mrb[59].mxu1 }
0x11e7   : > { %v4093_v4 = vadd.f32 %v3572_v3, %v2498_v15  ;;  %v2501_v5 = vsel %vm507_vm1, %v4090_v1, 0.0 }
0x11e8   : > { %2502 = vadd.xlane.f32.xlu0 %v2501_v5 }
0x11e9   : > { %v2504_v6 = vsel %vm507_vm1, %v4093_v4, 0.0 }
0x11ea   : > { %2505 = vadd.xlane.f32.xlu1 %v2504_v6  ;;  %v2642_v6 = vsub.s32 5, %v3782_v29 }
0x1275   : > { %v2503_v52 = vpop.xlane.xlu0 %2502 }
0x1276   : > { %v2507_v7 = vmul.f32 0.03125, %v2503_v52  ;;  %v2643_v52 = vrot.slane %v4108_v26, %v2642_v6 }
0x1277   : > { %v2506_v8 = vpop.xlane.xlu1 %2505 }
0x1278   : > { %v2509_v9 = vsub.f32 %v4090_v1, %v2507_v7  ;;  %v2508_v44 = vmul.f32 0.03125, %v2506_v8 }
0x127a   : > { %v2510_v10 = vsub.f32 %v4093_v4, %v2508_v44  ;;  %v2511_v11 = vmul.f32 %v2509_v9, %v2509_v9 }
0x127c   : > { %v2513_v13 = vsel %vm507_vm1, %v2511_v11, 0.0  ;;  %v2512_v14 = vmul.f32 %v2510_v10, %v2510_v10 }
0x127d   : > { %2514 = vadd.xlane.f32.xlu0 %v2513_v13 }
0x127e   : > { %v2516_v16 = vsel %vm507_vm1, %v2512_v14, 0.0 }
0x127f   : > { %2517 = vadd.xlane.f32.xlu1 %v2516_v16 }
0x130a   : > { %v2515_v19 = vpop.xlane.xlu0 %2514 }
0x130b   : > { %v2519_v22 = vmul.f32 0.03125, %v2515_v19 }
0x130c   : > { %v2518_v23 = vpop.xlane.xlu1 %2517 }
0x130d   : > { %v2521_v31 = vadd.f32 1e-05, %v2519_v22  ;;  %v2520_v24 = vmul.f32 0.03125, %v2518_v23 }
0x130f   : > { %3559 = vrsqrt.f32 %v2521_v31  ;;  %v2522_v35 = vadd.f32 1e-05, %v2520_v24  ;;  %v3574_v31 = vld [vmem:[%s4184_s4] sm:$0xff] (!%p3110_p10)   ;;  %v3633_v24 = vmov (!%p3110_p10), 0.0  }
0x1310   : > { %3459 = vmatprep.subr.bf16.mxu0 (!%p3110_p10), %v3633_v24 }
0x1311   : > { %3561 = vrsqrt.f32 %v2522_v35  ;;  %v3575_v35 = vld [vmem:[%s4184_s4 + $0x8] sm:$0xff] (!%p3110_p10)  }
0x1319   : > { %v3560_v30 = vpop.eup %3559 }
0x131a   : > { %v2525_v32 = vmul.f32 %v3560_v30, %v2509_v9  ;;  %v3112_v30 = vld [vmem:[%s4183_s3] ss:$0 sm:$0xff] (!%p3110_p10) }
0x131b   : > { %v3562_v33 = vpop.eup %3561 }
0x131c   : > { %v2531_v25 = vmul.f32 %v2530_v27, %v2525_v32  ;;  %v2526_v21 = vmul.f32 %v3562_v33, %v2510_v10  ;;  %v3113_v33 = vld [vmem:[%s4183_s3 + $0x1] ss:$0 sm:$0xff] (!%p3110_p10) }
0x131e   : > { %v2532_v36 = vmul.f32 %v2530_v27, %v2526_v21  ;;  %v2537_v38 = vadd.f32 %v2536_v34, %v2531_v25 }
0x1320   : > { %v2538_v39 = vadd.f32 %v2536_v34, %v2532_v36 }
0x1322   : > { %v2539_v40 = vpack.c.bf16 %v2538_v39, %v2537_v38 }
0x1324   : > { %3436 = vmatmul.mubr.msk.bf16.vlgmr.msra.gmra.mrb[68].mxu0 %vm507_vm1, %v2539_v40 }
0x1325   : > { %3463 = vmatprep.mubr.msk.bf16.mxu0 (!%p3110_p10), %vm3634_vm8, %v3633_v24  ;;  %3460 = vmatpush3.bf16.msra.mxu0 (!%p3110_p10), %v3574_v31 }
0x1326   : > { %3461 = vmatprep.subr.bf16.mxu0 (!%p3110_p10), %v3633_v24 }
0x1329   : > { %3462 = vmatpush3.bf16.msra.mxu0 (!%p3110_p10), %v3575_v35 }
0x13f7   : > { %v2600_v51 = vpop.f32.mrb[68].mxu0 }
0x13f8   : > { %v2601_v53 = vadd.f32 %v3096_v50, %v2600_v51  ;;  %v3437_v54 = vpop.f32.mrb[69].mxu0 }
0x13f9   : > { %v2603_v55 = vpop.f32.mrb[70].mxu0 }
0x13fa   : > { %v3100_v56 = vmul.f32 -1.702, %v2601_v53  ;;  %v2604_v57 = vadd.f32 %v3096_v50, %v2603_v55  ;;  %v3438_v58 = vpop.f32.mrb[71].mxu0 }
0x13fc   : > { %v2611_v59 = vmul.f32 1.442695, %v3100_v56  ;;  %v3101_v60 = vmul.f32 -1.702, %v2604_v57 }
0x13fe   : > { %3563 = vpow2.f32 %v2611_v59  ;;  %v2613_v61 = vmul.f32 1.442695, %v3101_v60 }
0x1400   : > { %3565 = vpow2.f32 %v2613_v61 }
0x1408   : > { %v3564_v20 = vpop.eup %3563 }
0x1409   : > { %v2615_v62 = vadd.f32 1.0, %v3564_v20 }
0x140a   : > { %v3566_v63 = vpop.eup %3565 }
0x140b   : > { %3567 = vrcp.f32 %v2615_v62  ;;  %v2616_v12 = vadd.f32 1.0, %v3566_v63 }
0x140d   : > { %3569 = vrcp.f32 %v2616_v12 }
0x1415   : > { %v3568_v0 = vpop.eup %3567 }
0x1416   : > { %v2621_v2 = vmul.f32 %v3568_v0, %v2601_v53 }
0x1417   : > { %v3570_v15 = vpop.eup %3569 }
0x1418   : > { %v2622_v3 = vmul.f32 %v3570_v15, %v2604_v57 }
0x141a   : > { %v2623_v5 = vpack.c.bf16 %v2622_v3, %v2621_v2 }
0x141c   : > { %3456 = vmatmul.mubr.bf16.vlgmr.msra.gmra.mrb[60].mxu1 %v2623_v5 }
0x14ef   : > { %v2726_v7 = vpop.f32.mrb[60].mxu1 }
0x14f0   : > { %v2727_v8 = vadd.f32 %v2726_v7, %v2643_v52  ;;  %v3457_v9 = vpop.f32.mrb[61].mxu1  ;;  %2740 = sbr.rel (%p3110_p10) target bundleno = 5913 (0x1719), region = 72 }
0x14f1   : > { %v2729_v44 = vpop.f32.mrb[62].mxu1 }
0x14f2   : > { %v2733_v10 = vadd.f32 %v2727_v8, %v4090_v1  ;;  %v2730_v11 = vadd.f32 %v2729_v44, %v2643_v52  ;;  %v3458_v13 = vpop.f32.mrb[63].mxu1 }
0x14f4   : > { %2735 = vst.msk [vmem:[#allocation2] sm:$0xff] %vm507_vm1, %v2733_v10  ;;  %v2734_v14 = vadd.f32 %v2730_v11, %v4093_v4 }
0x14f6   : > { %2736 = vst.msk [vmem:[#allocation2 + $0x8] sm:$0xff] %vm507_vm1, %v2734_v14 }
0x14fd   : > { %v2743_v29 = vld [vmem:[%s2742_s18] sm:$0x1] }
0x14fe   : > { %v2748_v16 = vld [vmem:[%s2747_s22] sm:$0x1]  ;;  %2745 = vst.msk [vmem:[#allocation7] sm:$0x1] %vm2744_vm6, %v2743_v29 }
0x14ff   : > { %2749 = vst.msk [vmem:[#allocation7 + $0x1] sm:$0x1] %vm2744_vm6, %v2748_v16 }
0x1506   : > { %v2750_v1 = vld [vmem:[#allocation7] sm:$0x3] }
0x1507   : > { %v2754_v17 = vsel %vm2753_vm7, %v2750_v1, 0.0 }
0x1508   : > { %2755 = vadd.xlane.f32.xlu0 %v2754_v17 }
0x1595   : > { %v2756_v18 = vpop.xlane.xlu0 %2755 }
0x1596   : > { %v2757_v4 = vmul.f32 0.03125, %v2756_v18 }
0x1598   : > { %v2758_v19 = vsub.f32 %v2750_v1, %v2757_v4 }
0x159a   : > { %v2759_v22 = vmul.f32 %v2758_v19, %v2758_v19 }
0x159c   : > { %v2760_v23 = vsel %vm2753_vm7, %v2759_v22, 0.0 }
0x159d   : > { %2761 = vadd.xlane.f32.xlu0 %v2760_v23 }
0x162a   : > { %v2762_v37 = vpop.xlane.xlu0 %2761 }
0x162b   : > { %v2763_v26 = vmul.f32 0.03125, %v2762_v37 }
0x162d   : > { %v2764_v27 = vadd.f32 1e-05, %v2763_v26 }
0x162f   : > { %3576 = vrsqrt.f32 %v2764_v27 }
0x1639   : > { %v3577_v28 = vpop.eup %3576 }
0x163a   : > { %v2766_v32 = vmul.f32 %v3577_v28, %v2758_v19 }
0x163c   : > { %v2771_v25 = vmul.f32 %v3112_v30, %v2766_v32 }
0x163e   : > { %v2776_v21 = vadd.f32 %v3113_v33, %v2771_v25 }
0x1640   : > { %v2777_v34 = vpack.c.bf16 %v2776_v21, %v2776_v21 }
0x1642   : > { %3464 = vmatmul.mubr.msk.bf16.vlgmr.msra.gmra.mrb[0].mxu0 %vm507_vm1, %v2777_v34 }
0x1715   : > { %v2831_v36 = vpop.f32.mrb[0].mxu0 }
0x1716   : > { %2838 = vst.msk [vmem:[#allocation10] sm:$0x3] %vm2837_vm9, %v2831_v36  ;;  %v3465_v38 = vpop.f32.mrb[1].mxu0 }
0x1717   : > { %v2834_v39 = vpop.f32.mrb[2].mxu0 }
0x1718   : > { %v3466_v40 = vpop.f32.mrb[3].mxu0 }
0x1719 PF: > { %p3473_p11 = scmp.eq.s32.totalorder %s3710_s0, 1  ;;  %s3635_s30 = smov [#allocation10]  }
0x171a   : > { %s2846_s19 = sshll.u32 %s3635_s30, 4  ;;  %s2847_s19 = int_to_ptr.vmem [resolvable:$true] %s2846_s19 }
0x171b   : > { %s3590_s20 = scalar_lea.vmem %s2847_s19, 32  ;;  %p3597_p1 = scmp.lt.s32.totalorder %s2847_s19, %s2847_s19 }
0x171c   : > { %p3591_p12 = scmp.ne.s32.totalorder %s2847_s19, %s3590_s20  ;;  %p3598_p2 = scmp.lt.s32.totalorder %s3590_s20, %s3590_s20 }
0x171e   : > { %p3592_p13 = pnand %p3591_p12, %p3473_p11  ;;  %p3599_p3 = por %p3598_p2, %p3597_p1 }
0x1720   : > { %p3593_p0 = pneg %p3592_p13 }
0x1722   : > { %p3600_p4 = pnand %p3599_p3, %p3593_p0 }
0x1724   : > { %3603 = shalt.err (!%p3600_p4)
}
0x1725   : > { %s4203_s7 = sld [smem:[#allocation17_spill]] }
0x172b   : > { %s3604_s12 = scalar_lea.hbm %s4203_s7, 32 }
0x172c   : > { %p3605_p5 = scmp.ne.s32.totalorder %s4203_s7, %s3604_s12  ;;  %p3610_p8 = scmp.lt.u32.totalorder %s3604_s12, %s4203_s7 }
0x172e   : > { %p3606_p6 = pnand %p3605_p5, %p3473_p11 }
0x1730   : > { %p3607_p7 = pneg %p3606_p6 }
0x1732   : > { %p3612_p9 = pnand %p3610_p8, %p3607_p7 }
0x1734   : > { %3615 = shalt.err (!%p3612_p9)
}
0x1735   : > { %3470 = dma.vmem_to_hbm [thread:$0]  (%p3473_p11), %s2847_s19, 32, %s4203_s7, [#allocation11]  }
0x1736   : > { %3623 = dma.done.wait (%p3473_p11), [#allocation11], 32  }
0x1737   : > { %3625 = vsyncadd (%p3473_p11), [#allocation11], 4294967264 }
0x1738 PF: > { %s4204_s23 = sld [smem:[#allocation14_spill]] }
0x173e   : > { %s29_s26 = sadd.s32 1, %s4204_s23  }
0x173f   : > { %p26_p10 = scmp.ge.s32.totalorder %s29_s26, 4  }
0x1741   :  { %28 = sbr.rel (!%p26_p10) target bundleno = 17 (0x11), region = 150 }
0x1748   :  { %2859 = vsyncpa [#allocation11], 1 }
0x1749   :  { %2861 = vsyncpa [#allocation11 + $0x1], 1 }

</bundles_post_ra>
